<compile_context>
chip_gen: v6e
topology: v6e:2x2x1
jax: 0.10.0
libtpu: 0.0.40
codegen_flags: <defaults>
</compile_context>

<pallas_src>
import jax
import jax.numpy as jnp
import numpy as np
from jax.experimental import pallas as pl
from jax.experimental.pallas import tpu as pltpu


def lstm_fc_kernel(x_ref, wih_ref, whh_ref, b_ref, wfc_ref, bfc_ref,
                   out_ref, xp_ref):
    # x_ref   : (B, S, I)     f32   batch_first, exactly the PyTorch layout
    # wih_ref : (I, 4*Hp)     f32   padded, gate-slot aligned, i/f/o cols *0.5
    # whh_ref : (Hp, 4*Hp)    bf16  padded, gate-slot aligned, i/f/o cols *0.5
    # b_ref   : (1, 4*Hp)     f32   b_ih + b_hh, padded, i/f/o cols *0.5
    # wfc_ref : (Hp, O)       f32   rows >= H are zero
    # bfc_ref : (1, O)        f32
    # out_ref : (B, O)        f32
    # xp_ref  : (B, S, 4*Hp)  f32   VMEM scratch: hoisted input projection
    B, S, _ = x_ref.shape
    Hp = whh_ref.shape[0]
    G = 4 * Hp

    # ---- hoisted input projection (off the recurrence critical path) -------
    # One tiny (S, I) @ (I, 4Hp) matmul per batch row, written to VMEM so the
    # time loop reads its row through the vld slot instead of doing per-step
    # sublane extracts from a long-lived register value.
    for b in range(B):
        xp_ref[b] = (jnp.dot(x_ref[b], wih_ref[...],
                             preferred_element_type=jnp.float32)
                     + b_ref[...])                               # (S, 4Hp)

    h = jnp.zeros((B, Hp), jnp.float32)
    c = jnp.zeros((B, Hp), jnp.float32)

    # Fully unrolled time loop; only h @ W_hh^T is serially dependent.  The
    # bf16 RHS ref is read at the dot site each step (no hoisted 32/64-vreg
    # value), so Mosaic streams it while the previous step's matmul runs.
    for t in range(S):
        gates = (xp_ref[:, t, :].reshape(B, G)
                 + jnp.dot(h.astype(jnp.bfloat16), whh_ref[...],
                           preferred_element_type=jnp.float32))  # (B, 4Hp)

        # 128-lane-aligned gate slices (Hp == 128): no cross-lane moves.
        # sigmoid(z) = 0.5*tanh(z/2) + 0.5; the /2 was pre-folded into the
        # i/f/o weight columns, so only the EUP tanh + one mul-add remain.
        i_g = 0.5 * jnp.tanh(gates[:, 0 * Hp:1 * Hp]) + 0.5
        f_g = 0.5 * jnp.tanh(gates[:, 1 * Hp:2 * Hp]) + 0.5
        g_g = jnp.tanh(gates[:, 2 * Hp:3 * Hp])
        o_g = 0.5 * jnp.tanh(gates[:, 3 * Hp:4 * Hp]) + 0.5

        c = f_g * c + i_g * g_g
        h = o_g * jnp.tanh(c)

    out_ref[...] = (jnp.dot(h, wfc_ref[...],
                            preferred_element_type=jnp.float32)
                    + bfc_ref[...]).astype(out_ref.dtype)


def io_model_forward(x, kparams):
    """x: (batch, seq, input_size) float32 — PyTorch batch_first convention.

    kparams: output of pad_params_for_kernel (padded, pre-transposed,
    pre-scaled weights; W_hh in bf16).  Single gridless pallas_call."""
    B, S, _ = x.shape
    Hp = kparams["whh_p"].shape[0]
    O = kparams["wfc_p"].shape[1]

    vmem = lambda: pl.BlockSpec(memory_space=pltpu.MemorySpace.VMEM)
    return pl.pallas_call(
        lstm_fc_kernel,
        out_shape=jax.ShapeDtypeStruct((B, O), jnp.float32),
        in_specs=[vmem(), vmem(), vmem(), vmem(), vmem(), vmem()],
        out_specs=vmem(),
        scratch_shapes=[pltpu.VMEM((B, S, 4 * Hp), jnp.float32)],
    )(x, kparams["wih_p"], kparams["whh_p"], kparams["b_p"],
      kparams["wfc_p"], kparams["bfc"])


def make_params(key, input_size=2, hidden_size=64, output_size=4):
    """Deterministic synthetic parameters, PyTorch-style U(-1/sqrt(H), 1/sqrt(H))."""
    k = 1.0 / np.sqrt(hidden_size)
    keys = jax.random.split(key, 6)
    w_ih = jax.random.uniform(keys[0], (4 * hidden_size, input_size),
                              jnp.float32, -k, k)
    w_hh = jax.random.uniform(keys[1], (4 * hidden_size, hidden_size),
                              jnp.float32, -k, k)
    b_ih = jax.random.uniform(keys[2], (4 * hidden_size,), jnp.float32, -k, k)
    b_hh = jax.random.uniform(keys[3], (4 * hidden_size,), jnp.float32, -k, k)
    w_fc = jax.random.uniform(keys[4], (output_size, hidden_size),
                              jnp.float32, -k, k)
    b_fc = jax.random.uniform(keys[5], (output_size,), jnp.float32, -k, k)
    return {
        "wih_t": w_ih.T,                       # (I, 4H)
        "whh_t": w_hh.T,                       # (H, 4H)
        "b": (b_ih + b_hh)[None, :],           # (1, 4H)
        "wfc_t": w_fc.T,                       # (H, O)
        "bfc": b_fc[None, :],                  # (1, O)
    }


def pad_params_for_kernel(params, lane=128):
    """One-time host-side prep:
      * pad H -> Hp (multiple of 128), one gate per 128-lane-aligned slot,
        zeros elsewhere (padded lanes of h/c stay exactly 0).
      * fold the 1/2 pre-scale of sigmoid(z)=0.5*tanh(z/2)+0.5 into the i/f/o
        gate columns of W_ih, W_hh and b (gate g keeps a plain tanh).
      * store W_hh in bf16 (serial-path matmul RHS); everything else f32."""
    wih_t = np.asarray(params["wih_t"], np.float32)    # (I, 4H)
    whh_t = np.asarray(params["whh_t"], np.float32)    # (H, 4H)
    b = np.asarray(params["b"], np.float32)            # (1, 4H)
    wfc_t = np.asarray(params["wfc_t"], np.float32)    # (H, O)
    bfc = np.asarray(params["bfc"], np.float32)        # (1, O)

    H = whh_t.shape[0]
    O = wfc_t.shape[1]
    Hp = ((H + lane - 1) // lane) * lane

    # PyTorch gate order [i, f, g, o]; sigmoid gates get the folded 0.5.
    slot_scale = np.array([0.5, 0.5, 1.0, 0.5], np.float32)

    def pad_gate_cols(w):                               # (rows, 4H) -> (rows, 4Hp)
        out = np.zeros((w.shape[0], 4 * Hp), np.float32)
        for g in range(4):
            out[:, g * Hp:g * Hp + H] = slot_scale[g] * w[:, g * H:(g + 1) * H]
        return out

    wih_p = pad_gate_cols(wih_t)                        # (I, 4Hp)
    whh_p = np.zeros((Hp, 4 * Hp), np.float32)
    whh_p[:H, :] = pad_gate_cols(whh_t)                 # (Hp, 4Hp)
    b_p = pad_gate_cols(b)                              # (1, 4Hp)
    wfc_p = np.zeros((Hp, O), np.float32)
    wfc_p[:H, :] = wfc_t                                # (Hp, O)

    return {
        "wih_p": jnp.asarray(wih_p),                            # f32
        "whh_p": jnp.asarray(whh_p, dtype=jnp.bfloat16),        # bf16 RHS
        "b_p": jnp.asarray(b_p),                                # f32
        "wfc_p": jnp.asarray(wfc_p),                            # f32
        "bfc": jnp.asarray(bfc),                                # f32
    }


def reference_forward(x, params):
    """Pure-JAX f32 reference of the PyTorch IOModel forward (gate order i,f,g,o)."""
    B, S, _ = x.shape
    H = params["whh_t"].shape[0]
    h = jnp.zeros((B, H), jnp.float32)
    c = jnp.zeros((B, H), jnp.float32)

    def step(carry, x_t):
        h, c = carry
        gates = x_t @ params["wih_t"] + h @ params["whh_t"] + params["b"]
        i = jax.nn.sigmoid(gates[:, 0 * H:1 * H])
        f = jax.nn.sigmoid(gates[:, 1 * H:2 * H])
        g = jnp.tanh(gates[:, 2 * H:3 * H])
        o = jax.nn.sigmoid(gates[:, 3 * H:4 * H])
        c = f * c + i * g
        h = o * jnp.tanh(c)
        return (h, c), None

    (h, c), _ = jax.lax.scan(step, (h, c), jnp.transpose(x, (1, 0, 2)))
    return h @ params["wfc_t"] + params["bfc"]


if __name__ == "__main__":
    key = jax.random.PRNGKey(0)
    k_param, k_x = jax.random.split(key)

    batch, seq, input_size, hidden_size, output_size = 2, 8, 2, 64, 4
    params = make_params(k_param, input_size, hidden_size, output_size)
    kparams = pad_params_for_kernel(params)
    x = jax.random.normal(k_x, (batch, seq, input_size), jnp.float32)

    out = jax.block_until_ready(io_model_forward(x, kparams))
    ref = jax.block_until_ready(reference_forward(x, params))

    # Padding and gate-slot 0.5-folding are exact; the tolerance budget is
    # dominated by the bf16 W_hh (f32-accumulated) recurrence matmul and the
    # tanh-form sigmoid, accumulated over seq=8 steps.
    np.testing.assert_allclose(np.asarray(out), np.asarray(ref),
                               rtol=2e-2, atol=1e-2)

    assert out.shape == (batch, output_size)
    print("KERNEL_OK")
</pallas_src>

<mosaic_0001>
module attributes {stable_mosaic.version = 11 : i64} {
  func.func @lstm_fc_kernel(%arg0: memref<2x8x2xf32, #tpu.memory_space<vmem>>, %arg1: memref<2x512xf32, #tpu.memory_space<vmem>>, %arg2: memref<128x512xbf16, #tpu.memory_space<vmem>>, %arg3: memref<1x512xf32, #tpu.memory_space<vmem>>, %arg4: memref<128x4xf32, #tpu.memory_space<vmem>>, %arg5: memref<1x4xf32, #tpu.memory_space<vmem>>, %arg6: memref<2x4xf32, #tpu.memory_space<vmem>>, %arg7: memref<2x8x512xf32, #tpu.memory_space<vmem>>) attributes {dimension_semantics = [], scalar_prefetch = 0 : i64, scratch_operands = 1 : i64, tpu.core_type = #tpu.core_type<tc>} {
    %c0 = arith.constant 0 : index
    %c0_0 = arith.constant 0 : index
    %c0_1 = arith.constant 0 : index
    %0 = vector.load %arg0[%c0, %c0_0, %c0_1] : memref<2x8x2xf32, #tpu.memory_space<vmem>>, vector<1x8x2xf32>
    %1 = vector.shape_cast %0 : vector<1x8x2xf32> to vector<8x2xf32>
    %c0_2 = arith.constant 0 : index
    %c0_3 = arith.constant 0 : index
    %2 = vector.load %arg1[%c0_2, %c0_3] : memref<2x512xf32, #tpu.memory_space<vmem>>, vector<2x512xf32>
    %cst = arith.constant dense<0.000000e+00> : vector<8x512xf32>
    %3 = tpu.matmul %1, %2, %cst {dimension_numbers = #tpu.dot_dimension_numbers<[1], [0], [0], [1], [0, 0, 1, 1], [], []>} : vector<8x2xf32>, vector<2x512xf32>, vector<8x512xf32> -> vector<8x512xf32>
    %c0_4 = arith.constant 0 : index
    %c0_5 = arith.constant 0 : index
    %4 = vector.load %arg3[%c0_4, %c0_5] : memref<1x512xf32, #tpu.memory_space<vmem>>, vector<1x512xf32>
    %5 = vector.broadcast %4 : vector<1x512xf32> to vector<8x512xf32>
    %6 = arith.addf %3, %5 : vector<8x512xf32>
    %c0_6 = arith.constant 0 : index
    %c0_7 = arith.constant 0 : index
    %c0_8 = arith.constant 0 : index
    %7 = vector.load %arg7[%c0_6, %c0_7, %c0_8] : memref<2x8x512xf32, #tpu.memory_space<vmem>>, vector<1x8x512xf32>
    %8 = vector.shape_cast %7 : vector<1x8x512xf32> to vector<8x512xf32>
    %9 = vector.shape_cast %6 : vector<8x512xf32> to vector<1x8x512xf32>
    tpu.vector_store %arg7[%c0_6, %c0_7, %c0_8], %9 {strides = array<i32>} : memref<2x8x512xf32, #tpu.memory_space<vmem>>, vector<1x8x512xf32>,
    %c1 = arith.constant 1 : index
    %c0_9 = arith.constant 0 : index
    %c0_10 = arith.constant 0 : index
    %10 = vector.load %arg0[%c1, %c0_9, %c0_10] : memref<2x8x2xf32, #tpu.memory_space<vmem>>, vector<1x8x2xf32>
    %11 = vector.shape_cast %10 : vector<1x8x2xf32> to vector<8x2xf32>
    %c0_11 = arith.constant 0 : index
    %c0_12 = arith.constant 0 : index
    %12 = vector.load %arg1[%c0_11, %c0_12] : memref<2x512xf32, #tpu.memory_space<vmem>>, vector<2x512xf32>
    %cst_13 = arith.constant dense<0.000000e+00> : vector<8x512xf32>
    %13 = tpu.matmul %11, %12, %cst_13 {dimension_numbers = #tpu.dot_dimension_numbers<[1], [0], [0], [1], [0, 0, 1, 1], [], []>} : vector<8x2xf32>, vector<2x512xf32>, vector<8x512xf32> -> vector<8x512xf32>
    %c0_14 = arith.constant 0 : index
    %c0_15 = arith.constant 0 : index
    %14 = vector.load %arg3[%c0_14, %c0_15] : memref<1x512xf32, #tpu.memory_space<vmem>>, vector<1x512xf32>
    %15 = vector.broadcast %14 : vector<1x512xf32> to vector<8x512xf32>
    %16 = arith.addf %13, %15 : vector<8x512xf32>
    %c1_16 = arith.constant 1 : index
    %c0_17 = arith.constant 0 : index
    %c0_18 = arith.constant 0 : index
    %17 = vector.load %arg7[%c1_16, %c0_17, %c0_18] : memref<2x8x512xf32, #tpu.memory_space<vmem>>, vector<1x8x512xf32>
    %18 = vector.shape_cast %17 : vector<1x8x512xf32> to vector<8x512xf32>
    %19 = vector.shape_cast %16 : vector<8x512xf32> to vector<1x8x512xf32>
    tpu.vector_store %arg7[%c1_16, %c0_17, %c0_18], %19 {strides = array<i32>} : memref<2x8x512xf32, #tpu.memory_space<vmem>>, vector<1x8x512xf32>,
    %cst_19 = arith.constant 0.000000e+00 : f32
    %20 = vector.broadcast %cst_19 : f32 to vector<2x128xf32>
    %cst_20 = arith.constant 0.000000e+00 : f32
    %21 = vector.broadcast %cst_20 : f32 to vector<2x128xf32>
    %c0_21 = arith.constant 0 : index
    %c0_22 = arith.constant 0 : index
    %c0_23 = arith.constant 0 : index
    %22 = vector.load %arg7[%c0_21, %c0_22, %c0_23] : memref<2x8x512xf32, #tpu.memory_space<vmem>>, vector<2x1x512xf32>
    %23 = vector.shape_cast %22 : vector<2x1x512xf32> to vector<2x512xf32>
    %24 = arith.truncf %20 : vector<2x128xf32> to vector<2x128xbf16>
    %c0_24 = arith.constant 0 : index
    %c0_25 = arith.constant 0 : index
    %25 = vector.load %arg2[%c0_24, %c0_25] : memref<128x512xbf16, #tpu.memory_space<vmem>>, vector<128x512xbf16>
    %cst_26 = arith.constant dense<0.000000e+00> : vector<2x512xf32>
    %26 = tpu.matmul %24, %25, %cst_26 {dimension_numbers = #tpu.dot_dimension_numbers<[1], [0], [0], [1], [0, 0, 1, 1], [], []>} : vector<2x128xbf16>, vector<128x512xbf16>, vector<2x512xf32> -> vector<2x512xf32>
    %27 = arith.addf %23, %26 : vector<2x512xf32>
    %28 = vector.extract_strided_slice %27 {offsets = [0, 0], sizes = [2, 128], strides = [1, 1]} : vector<2x512xf32> to vector<2x128xf32>
    %29 = math.tanh %28 : vector<2x128xf32>
    %cst_27 = arith.constant 5.000000e-01 : f32
    %30 = vector.broadcast %cst_27 : f32 to vector<2x128xf32>
    %31 = arith.mulf %30, %29 : vector<2x128xf32>
    %cst_28 = arith.constant 5.000000e-01 : f32
    %32 = vector.broadcast %cst_28 : f32 to vector<2x128xf32>
    %33 = arith.addf %31, %32 : vector<2x128xf32>
    %34 = vector.extract_strided_slice %27 {offsets = [0, 128], sizes = [2, 128], strides = [1, 1]} : vector<2x512xf32> to vector<2x128xf32>
    %35 = math.tanh %34 : vector<2x128xf32>
    %cst_29 = arith.constant 5.000000e-01 : f32
    %36 = vector.broadcast %cst_29 : f32 to vector<2x128xf32>
    %37 = arith.mulf %36, %35 : vector<2x128xf32>
    %cst_30 = arith.constant 5.000000e-01 : f32
    %38 = vector.broadcast %cst_30 : f32 to vector<2x128xf32>
    %39 = arith.addf %37, %38 : vector<2x128xf32>
    %40 = vector.extract_strided_slice %27 {offsets = [0, 256], sizes = [2, 128], strides = [1, 1]} : vector<2x512xf32> to vector<2x128xf32>
    %41 = math.tanh %40 : vector<2x128xf32>
    %42 = vector.extract_strided_slice %27 {offsets = [0, 384], sizes = [2, 128], strides = [1, 1]} : vector<2x512xf32> to vector<2x128xf32>
    %43 = math.tanh %42 : vector<2x128xf32>
    %cst_31 = arith.constant 5.000000e-01 : f32
    %44 = vector.broadcast %cst_31 : f32 to vector<2x128xf32>
    %45 = arith.mulf %44, %43 : vector<2x128xf32>
    %cst_32 = arith.constant 5.000000e-01 : f32
    %46 = vector.broadcast %cst_32 : f32 to vector<2x128xf32>
    %47 = arith.addf %45, %46 : vector<2x128xf32>
    %48 = arith.mulf %39, %21 : vector<2x128xf32>
    %49 = arith.mulf %33, %41 : vector<2x128xf32>
    %50 = arith.addf %48, %49 : vector<2x128xf32>
    %51 = math.tanh %50 : vector<2x128xf32>
    %52 = arith.mulf %47, %51 : vector<2x128xf32>
    %c0_33 = arith.constant 0 : index
    %c1_34 = arith.constant 1 : index
    %c0_35 = arith.constant 0 : index
    %53 = vector.load %arg7[%c0_33, %c1_34, %c0_35] : memref<2x8x512xf32, #tpu.memory_space<vmem>>, vector<2x1x512xf32>
    %54 = vector.shape_cast %53 : vector<2x1x512xf32> to vector<2x512xf32>
    %55 = arith.truncf %52 : vector<2x128xf32> to vector<2x128xbf16>
    %c0_36 = arith.constant 0 : index
    %c0_37 = arith.constant 0 : index
    %56 = vector.load %arg2[%c0_36, %c0_37] : memref<128x512xbf16, #tpu.memory_space<vmem>>, vector<128x512xbf16>
    %cst_38 = arith.constant dense<0.000000e+00> : vector<2x512xf32>
    %57 = tpu.matmul %55, %56, %cst_38 {dimension_numbers = #tpu.dot_dimension_numbers<[1], [0], [0], [1], [0, 0, 1, 1], [], []>} : vector<2x128xbf16>, vector<128x512xbf16>, vector<2x512xf32> -> vector<2x512xf32>
    %58 = arith.addf %54, %57 : vector<2x512xf32>
    %59 = vector.extract_strided_slice %58 {offsets = [0, 0], sizes = [2, 128], strides = [1, 1]} : vector<2x512xf32> to vector<2x128xf32>
    %60 = math.tanh %59 : vector<2x128xf32>
    %cst_39 = arith.constant 5.000000e-01 : f32
    %61 = vector.broadcast %cst_39 : f32 to vector<2x128xf32>
    %62 = arith.mulf %61, %60 : vector<2x128xf32>
    %cst_40 = arith.constant 5.000000e-01 : f32
    %63 = vector.broadcast %cst_40 : f32 to vector<2x128xf32>
    %64 = arith.addf %62, %63 : vector<2x128xf32>
    %65 = vector.extract_strided_slice %58 {offsets = [0, 128], sizes = [2, 128], strides = [1, 1]} : vector<2x512xf32> to vector<2x128xf32>
    %66 = math.tanh %65 : vector<2x128xf32>
    %cst_41 = arith.constant 5.000000e-01 : f32
    %67 = vector.broadcast %cst_41 : f32 to vector<2x128xf32>
    %68 = arith.mulf %67, %66 : vector<2x128xf32>
    %cst_42 = arith.constant 5.000000e-01 : f32
    %69 = vector.broadcast %cst_42 : f32 to vector<2x128xf32>
    %70 = arith.addf %68, %69 : vector<2x128xf32>
    %71 = vector.extract_strided_slice %58 {offsets = [0, 256], sizes = [2, 128], strides = [1, 1]} : vector<2x512xf32> to vector<2x128xf32>
    %72 = math.tanh %71 : vector<2x128xf32>
    %73 = vector.extract_strided_slice %58 {offsets = [0, 384], sizes = [2, 128], strides = [1, 1]} : vector<2x512xf32> to vector<2x128xf32>
    %74 = math.tanh %73 : vector<2x128xf32>
    %cst_43 = arith.constant 5.000000e-01 : f32
    %75 = vector.broadcast %cst_43 : f32 to vector<2x128xf32>
    %76 = arith.mulf %75, %74 : vector<2x128xf32>
    %cst_44 = arith.constant 5.000000e-01 : f32
    %77 = vector.broadcast %cst_44 : f32 to vector<2x128xf32>
    %78 = arith.addf %76, %77 : vector<2x128xf32>
    %79 = arith.mulf %70, %50 : vector<2x128xf32>
    %80 = arith.mulf %64, %72 : vector<2x128xf32>
    %81 = arith.addf %79, %80 : vector<2x128xf32>
    %82 = math.tanh %81 : vector<2x128xf32>
    %83 = arith.mulf %78, %82 : vector<2x128xf32>
    %c0_45 = arith.constant 0 : index
    %c2 = arith.constant 2 : index
    %c0_46 = arith.constant 0 : index
    %84 = vector.load %arg7[%c0_45, %c2, %c0_46] : memref<2x8x512xf32, #tpu.memory_space<vmem>>, vector<2x1x512xf32>
    %85 = vector.shape_cast %84 : vector<2x1x512xf32> to vector<2x512xf32>
    %86 = arith.truncf %83 : vector<2x128xf32> to vector<2x128xbf16>
    %c0_47 = arith.constant 0 : index
    %c0_48 = arith.constant 0 : index
    %87 = vector.load %arg2[%c0_47, %c0_48] : memref<128x512xbf16, #tpu.memory_space<vmem>>, vector<128x512xbf16>
    %cst_49 = arith.constant dense<0.000000e+00> : vector<2x512xf32>
    %88 = tpu.matmul %86, %87, %cst_49 {dimension_numbers = #tpu.dot_dimension_numbers<[1], [0], [0], [1], [0, 0, 1, 1], [], []>} : vector<2x128xbf16>, vector<128x512xbf16>, vector<2x512xf32> -> vector<2x512xf32>
    %89 = arith.addf %85, %88 : vector<2x512xf32>
    %90 = vector.extract_strided_slice %89 {offsets = [0, 0], sizes = [2, 128], strides = [1, 1]} : vector<2x512xf32> to vector<2x128xf32>
    %91 = math.tanh %90 : vector<2x128xf32>
    %cst_50 = arith.constant 5.000000e-01 : f32
    %92 = vector.broadcast %cst_50 : f32 to vector<2x128xf32>
    %93 = arith.mulf %92, %91 : vector<2x128xf32>
    %cst_51 = arith.constant 5.000000e-01 : f32
    %94 = vector.broadcast %cst_51 : f32 to vector<2x128xf32>
    %95 = arith.addf %93, %94 : vector<2x128xf32>
    %96 = vector.extract_strided_slice %89 {offsets = [0, 128], sizes = [2, 128], strides = [1, 1]} : vector<2x512xf32> to vector<2x128xf32>
    %97 = math.tanh %96 : vector<2x128xf32>
    %cst_52 = arith.constant 5.000000e-01 : f32
    %98 = vector.broadcast %cst_52 : f32 to vector<2x128xf32>
    %99 = arith.mulf %98, %97 : vector<2x128xf32>
    %cst_53 = arith.constant 5.000000e-01 : f32
    %100 = vector.broadcast %cst_53 : f32 to vector<2x128xf32>
    %101 = arith.addf %99, %100 : vector<2x128xf32>
    %102 = vector.extract_strided_slice %89 {offsets = [0, 256], sizes = [2, 128], strides = [1, 1]} : vector<2x512xf32> to vector<2x128xf32>
    %103 = math.tanh %102 : vector<2x128xf32>
    %104 = vector.extract_strided_slice %89 {offsets = [0, 384], sizes = [2, 128], strides = [1, 1]} : vector<2x512xf32> to vector<2x128xf32>
    %105 = math.tanh %104 : vector<2x128xf32>
    %cst_54 = arith.constant 5.000000e-01 : f32
    %106 = vector.broadcast %cst_54 : f32 to vector<2x128xf32>
    %107 = arith.mulf %106, %105 : vector<2x128xf32>
    %cst_55 = arith.constant 5.000000e-01 : f32
    %108 = vector.broadcast %cst_55 : f32 to vector<2x128xf32>
    %109 = arith.addf %107, %108 : vector<2x128xf32>
    %110 = arith.mulf %101, %81 : vector<2x128xf32>
    %111 = arith.mulf %95, %103 : vector<2x128xf32>
    %112 = arith.addf %110, %111 : vector<2x128xf32>
    %113 = math.tanh %112 : vector<2x128xf32>
    %114 = arith.mulf %109, %113 : vector<2x128xf32>
    %c0_56 = arith.constant 0 : index
    %c3 = arith.constant 3 : index
    %c0_57 = arith.constant 0 : index
    %115 = vector.load %arg7[%c0_56, %c3, %c0_57] : memref<2x8x512xf32, #tpu.memory_space<vmem>>, vector<2x1x512xf32>
    %116 = vector.shape_cast %115 : vector<2x1x512xf32> to vector<2x512xf32>
    %117 = arith.truncf %114 : vector<2x128xf32> to vector<2x128xbf16>
    %c0_58 = arith.constant 0 : index
    %c0_59 = arith.constant 0 : index
    %118 = vector.load %arg2[%c0_58, %c0_59] : memref<128x512xbf16, #tpu.memory_space<vmem>>, vector<128x512xbf16>
    %cst_60 = arith.constant dense<0.000000e+00> : vector<2x512xf32>
    %119 = tpu.matmul %117, %118, %cst_60 {dimension_numbers = #tpu.dot_dimension_numbers<[1], [0], [0], [1], [0, 0, 1, 1], [], []>} : vector<2x128xbf16>, vector<128x512xbf16>, vector<2x512xf32> -> vector<2x512xf32>
    %120 = arith.addf %116, %119 : vector<2x512xf32>
    %121 = vector.extract_strided_slice %120 {offsets = [0, 0], sizes = [2, 128], strides = [1, 1]} : vector<2x512xf32> to vector<2x128xf32>
    %122 = math.tanh %121 : vector<2x128xf32>
    %cst_61 = arith.constant 5.000000e-01 : f32
    %123 = vector.broadcast %cst_61 : f32 to vector<2x128xf32>
    %124 = arith.mulf %123, %122 : vector<2x128xf32>
    %cst_62 = arith.constant 5.000000e-01 : f32
    %125 = vector.broadcast %cst_62 : f32 to vector<2x128xf32>
    %126 = arith.addf %124, %125 : vector<2x128xf32>
    %127 = vector.extract_strided_slice %120 {offsets = [0, 128], sizes = [2, 128], strides = [1, 1]} : vector<2x512xf32> to vector<2x128xf32>
    %128 = math.tanh %127 : vector<2x128xf32>
    %cst_63 = arith.constant 5.000000e-01 : f32
    %129 = vector.broadcast %cst_63 : f32 to vector<2x128xf32>
    %130 = arith.mulf %129, %128 : vector<2x128xf32>
    %cst_64 = arith.constant 5.000000e-01 : f32
    %131 = vector.broadcast %cst_64 : f32 to vector<2x128xf32>
    %132 = arith.addf %130, %131 : vector<2x128xf32>
    %133 = vector.extract_strided_slice %120 {offsets = [0, 256], sizes = [2, 128], strides = [1, 1]} : vector<2x512xf32> to vector<2x128xf32>
    %134 = math.tanh %133 : vector<2x128xf32>
    %135 = vector.extract_strided_slice %120 {offsets = [0, 384], sizes = [2, 128], strides = [1, 1]} : vector<2x512xf32> to vector<2x128xf32>
    %136 = math.tanh %135 : vector<2x128xf32>
    %cst_65 = arith.constant 5.000000e-01 : f32
    %137 = vector.broadcast %cst_65 : f32 to vector<2x128xf32>
    %138 = arith.mulf %137, %136 : vector<2x128xf32>
    %cst_66 = arith.constant 5.000000e-01 : f32
    %139 = vector.broadcast %cst_66 : f32 to vector<2x128xf32>
    %140 = arith.addf %138, %139 : vector<2x128xf32>
    %141 = arith.mulf %132, %112 : vector<2x128xf32>
    %142 = arith.mulf %126, %134 : vector<2x128xf32>
    %143 = arith.addf %141, %142 : vector<2x128xf32>
    %144 = math.tanh %143 : vector<2x128xf32>
    %145 = arith.mulf %140, %144 : vector<2x128xf32>
    %c0_67 = arith.constant 0 : index
    %c4 = arith.constant 4 : index
    %c0_68 = arith.constant 0 : index
    %146 = vector.load %arg7[%c0_67, %c4, %c0_68] : memref<2x8x512xf32, #tpu.memory_space<vmem>>, vector<2x1x512xf32>
    %147 = vector.shape_cast %146 : vector<2x1x512xf32> to vector<2x512xf32>
    %148 = arith.truncf %145 : vector<2x128xf32> to vector<2x128xbf16>
    %c0_69 = arith.constant 0 : index
    %c0_70 = arith.constant 0 : index
    %149 = vector.load %arg2[%c0_69, %c0_70] : memref<128x512xbf16, #tpu.memory_space<vmem>>, vector<128x512xbf16>
    %cst_71 = arith.constant dense<0.000000e+00> : vector<2x512xf32>
    %150 = tpu.matmul %148, %149, %cst_71 {dimension_numbers = #tpu.dot_dimension_numbers<[1], [0], [0], [1], [0, 0, 1, 1], [], []>} : vector<2x128xbf16>, vector<128x512xbf16>, vector<2x512xf32> -> vector<2x512xf32>
    %151 = arith.addf %147, %150 : vector<2x512xf32>
    %152 = vector.extract_strided_slice %151 {offsets = [0, 0], sizes = [2, 128], strides = [1, 1]} : vector<2x512xf32> to vector<2x128xf32>
    %153 = math.tanh %152 : vector<2x128xf32>
    %cst_72 = arith.constant 5.000000e-01 : f32
    %154 = vector.broadcast %cst_72 : f32 to vector<2x128xf32>
    %155 = arith.mulf %154, %153 : vector<2x128xf32>
    %cst_73 = arith.constant 5.000000e-01 : f32
    %156 = vector.broadcast %cst_73 : f32 to vector<2x128xf32>
    %157 = arith.addf %155, %156 : vector<2x128xf32>
    %158 = vector.extract_strided_slice %151 {offsets = [0, 128], sizes = [2, 128], strides = [1, 1]} : vector<2x512xf32> to vector<2x128xf32>
    %159 = math.tanh %158 : vector<2x128xf32>
    %cst_74 = arith.constant 5.000000e-01 : f32
    %160 = vector.broadcast %cst_74 : f32 to vector<2x128xf32>
    %161 = arith.mulf %160, %159 : vector<2x128xf32>
    %cst_75 = arith.constant 5.000000e-01 : f32
    %162 = vector.broadcast %cst_75 : f32 to vector<2x128xf32>
    %163 = arith.addf %161, %162 : vector<2x128xf32>
    %164 = vector.extract_strided_slice %151 {offsets = [0, 256], sizes = [2, 128], strides = [1, 1]} : vector<2x512xf32> to vector<2x128xf32>
    %165 = math.tanh %164 : vector<2x128xf32>
    %166 = vector.extract_strided_slice %151 {offsets = [0, 384], sizes = [2, 128], strides = [1, 1]} : vector<2x512xf32> to vector<2x128xf32>
    %167 = math.tanh %166 : vector<2x128xf32>
    %cst_76 = arith.constant 5.000000e-01 : f32
    %168 = vector.broadcast %cst_76 : f32 to vector<2x128xf32>
    %169 = arith.mulf %168, %167 : vector<2x128xf32>
    %cst_77 = arith.constant 5.000000e-01 : f32
    %170 = vector.broadcast %cst_77 : f32 to vector<2x128xf32>
    %171 = arith.addf %169, %170 : vector<2x128xf32>
    %172 = arith.mulf %163, %143 : vector<2x128xf32>
    %173 = arith.mulf %157, %165 : vector<2x128xf32>
    %174 = arith.addf %172, %173 : vector<2x128xf32>
    %175 = math.tanh %174 : vector<2x128xf32>
    %176 = arith.mulf %171, %175 : vector<2x128xf32>
    %c0_78 = arith.constant 0 : index
    %c5 = arith.constant 5 : index
    %c0_79 = arith.constant 0 : index
    %177 = vector.load %arg7[%c0_78, %c5, %c0_79] : memref<2x8x512xf32, #tpu.memory_space<vmem>>, vector<2x1x512xf32>
    %178 = vector.shape_cast %177 : vector<2x1x512xf32> to vector<2x512xf32>
    %179 = arith.truncf %176 : vector<2x128xf32> to vector<2x128xbf16>
    %c0_80 = arith.constant 0 : index
    %c0_81 = arith.constant 0 : index
    %180 = vector.load %arg2[%c0_80, %c0_81] : memref<128x512xbf16, #tpu.memory_space<vmem>>, vector<128x512xbf16>
    %cst_82 = arith.constant dense<0.000000e+00> : vector<2x512xf32>
    %181 = tpu.matmul %179, %180, %cst_82 {dimension_numbers = #tpu.dot_dimension_numbers<[1], [0], [0], [1], [0, 0, 1, 1], [], []>} : vector<2x128xbf16>, vector<128x512xbf16>, vector<2x512xf32> -> vector<2x512xf32>
    %182 = arith.addf %178, %181 : vector<2x512xf32>
    %183 = vector.extract_strided_slice %182 {offsets = [0, 0], sizes = [2, 128], strides = [1, 1]} : vector<2x512xf32> to vector<2x128xf32>
    %184 = math.tanh %183 : vector<2x128xf32>
    %cst_83 = arith.constant 5.000000e-01 : f32
    %185 = vector.broadcast %cst_83 : f32 to vector<2x128xf32>
    %186 = arith.mulf %185, %184 : vector<2x128xf32>
    %cst_84 = arith.constant 5.000000e-01 : f32
    %187 = vector.broadcast %cst_84 : f32 to vector<2x128xf32>
    %188 = arith.addf %186, %187 : vector<2x128xf32>
    %189 = vector.extract_strided_slice %182 {offsets = [0, 128], sizes = [2, 128], strides = [1, 1]} : vector<2x512xf32> to vector<2x128xf32>
    %190 = math.tanh %189 : vector<2x128xf32>
    %cst_85 = arith.constant 5.000000e-01 : f32
    %191 = vector.broadcast %cst_85 : f32 to vector<2x128xf32>
    %192 = arith.mulf %191, %190 : vector<2x128xf32>
    %cst_86 = arith.constant 5.000000e-01 : f32
    %193 = vector.broadcast %cst_86 : f32 to vector<2x128xf32>
    %194 = arith.addf %192, %193 : vector<2x128xf32>
    %195 = vector.extract_strided_slice %182 {offsets = [0, 256], sizes = [2, 128], strides = [1, 1]} : vector<2x512xf32> to vector<2x128xf32>
    %196 = math.tanh %195 : vector<2x128xf32>
    %197 = vector.extract_strided_slice %182 {offsets = [0, 384], sizes = [2, 128], strides = [1, 1]} : vector<2x512xf32> to vector<2x128xf32>
    %198 = math.tanh %197 : vector<2x128xf32>
    %cst_87 = arith.constant 5.000000e-01 : f32
    %199 = vector.broadcast %cst_87 : f32 to vector<2x128xf32>
    %200 = arith.mulf %199, %198 : vector<2x128xf32>
    %cst_88 = arith.constant 5.000000e-01 : f32
    %201 = vector.broadcast %cst_88 : f32 to vector<2x128xf32>
    %202 = arith.addf %200, %201 : vector<2x128xf32>
    %203 = arith.mulf %194, %174 : vector<2x128xf32>
    %204 = arith.mulf %188, %196 : vector<2x128xf32>
    %205 = arith.addf %203, %204 : vector<2x128xf32>
    %206 = math.tanh %205 : vector<2x128xf32>
    %207 = arith.mulf %202, %206 : vector<2x128xf32>
    %c0_89 = arith.constant 0 : index
    %c6 = arith.constant 6 : index
    %c0_90 = arith.constant 0 : index
    %208 = vector.load %arg7[%c0_89, %c6, %c0_90] : memref<2x8x512xf32, #tpu.memory_space<vmem>>, vector<2x1x512xf32>
    %209 = vector.shape_cast %208 : vector<2x1x512xf32> to vector<2x512xf32>
    %210 = arith.truncf %207 : vector<2x128xf32> to vector<2x128xbf16>
    %c0_91 = arith.constant 0 : index
    %c0_92 = arith.constant 0 : index
    %211 = vector.load %arg2[%c0_91, %c0_92] : memref<128x512xbf16, #tpu.memory_space<vmem>>, vector<128x512xbf16>
    %cst_93 = arith.constant dense<0.000000e+00> : vector<2x512xf32>
    %212 = tpu.matmul %210, %211, %cst_93 {dimension_numbers = #tpu.dot_dimension_numbers<[1], [0], [0], [1], [0, 0, 1, 1], [], []>} : vector<2x128xbf16>, vector<128x512xbf16>, vector<2x512xf32> -> vector<2x512xf32>
    %213 = arith.addf %209, %212 : vector<2x512xf32>
    %214 = vector.extract_strided_slice %213 {offsets = [0, 0], sizes = [2, 128], strides = [1, 1]} : vector<2x512xf32> to vector<2x128xf32>
    %215 = math.tanh %214 : vector<2x128xf32>
    %cst_94 = arith.constant 5.000000e-01 : f32
    %216 = vector.broadcast %cst_94 : f32 to vector<2x128xf32>
    %217 = arith.mulf %216, %215 : vector<2x128xf32>
    %cst_95 = arith.constant 5.000000e-01 : f32
    %218 = vector.broadcast %cst_95 : f32 to vector<2x128xf32>
    %219 = arith.addf %217, %218 : vector<2x128xf32>
    %220 = vector.extract_strided_slice %213 {offsets = [0, 128], sizes = [2, 128], strides = [1, 1]} : vector<2x512xf32> to vector<2x128xf32>
    %221 = math.tanh %220 : vector<2x128xf32>
    %cst_96 = arith.constant 5.000000e-01 : f32
    %222 = vector.broadcast %cst_96 : f32 to vector<2x128xf32>
    %223 = arith.mulf %222, %221 : vector<2x128xf32>
    %cst_97 = arith.constant 5.000000e-01 : f32
    %224 = vector.broadcast %cst_97 : f32 to vector<2x128xf32>
    %225 = arith.addf %223, %224 : vector<2x128xf32>
    %226 = vector.extract_strided_slice %213 {offsets = [0, 256], sizes = [2, 128], strides = [1, 1]} : vector<2x512xf32> to vector<2x128xf32>
    %227 = math.tanh %226 : vector<2x128xf32>
    %228 = vector.extract_strided_slice %213 {offsets = [0, 384], sizes = [2, 128], strides = [1, 1]} : vector<2x512xf32> to vector<2x128xf32>
    %229 = math.tanh %228 : vector<2x128xf32>
    %cst_98 = arith.constant 5.000000e-01 : f32
    %230 = vector.broadcast %cst_98 : f32 to vector<2x128xf32>
    %231 = arith.mulf %230, %229 : vector<2x128xf32>
    %cst_99 = arith.constant 5.000000e-01 : f32
    %232 = vector.broadcast %cst_99 : f32 to vector<2x128xf32>
    %233 = arith.addf %231, %232 : vector<2x128xf32>
    %234 = arith.mulf %225, %205 : vector<2x128xf32>
    %235 = arith.mulf %219, %227 : vector<2x128xf32>
    %236 = arith.addf %234, %235 : vector<2x128xf32>
    %237 = math.tanh %236 : vector<2x128xf32>
    %238 = arith.mulf %233, %237 : vector<2x128xf32>
    %c0_100 = arith.constant 0 : index
    %c7 = arith.constant 7 : index
    %c0_101 = arith.constant 0 : index
    %239 = vector.load %arg7[%c0_100, %c7, %c0_101] : memref<2x8x512xf32, #tpu.memory_space<vmem>>, vector<2x1x512xf32>
    %240 = vector.shape_cast %239 : vector<2x1x512xf32> to vector<2x512xf32>
    %241 = arith.truncf %238 : vector<2x128xf32> to vector<2x128xbf16>
    %c0_102 = arith.constant 0 : index
    %c0_103 = arith.constant 0 : index
    %242 = vector.load %arg2[%c0_102, %c0_103] : memref<128x512xbf16, #tpu.memory_space<vmem>>, vector<128x512xbf16>
    %cst_104 = arith.constant dense<0.000000e+00> : vector<2x512xf32>
    %243 = tpu.matmul %241, %242, %cst_104 {dimension_numbers = #tpu.dot_dimension_numbers<[1], [0], [0], [1], [0, 0, 1, 1], [], []>} : vector<2x128xbf16>, vector<128x512xbf16>, vector<2x512xf32> -> vector<2x512xf32>
    %244 = arith.addf %240, %243 : vector<2x512xf32>
    %245 = vector.extract_strided_slice %244 {offsets = [0, 0], sizes = [2, 128], strides = [1, 1]} : vector<2x512xf32> to vector<2x128xf32>
    %246 = math.tanh %245 : vector<2x128xf32>
    %cst_105 = arith.constant 5.000000e-01 : f32
    %247 = vector.broadcast %cst_105 : f32 to vector<2x128xf32>
    %248 = arith.mulf %247, %246 : vector<2x128xf32>
    %cst_106 = arith.constant 5.000000e-01 : f32
    %249 = vector.broadcast %cst_106 : f32 to vector<2x128xf32>
    %250 = arith.addf %248, %249 : vector<2x128xf32>
    %251 = vector.extract_strided_slice %244 {offsets = [0, 128], sizes = [2, 128], strides = [1, 1]} : vector<2x512xf32> to vector<2x128xf32>
    %252 = math.tanh %251 : vector<2x128xf32>
    %cst_107 = arith.constant 5.000000e-01 : f32
    %253 = vector.broadcast %cst_107 : f32 to vector<2x128xf32>
    %254 = arith.mulf %253, %252 : vector<2x128xf32>
    %cst_108 = arith.constant 5.000000e-01 : f32
    %255 = vector.broadcast %cst_108 : f32 to vector<2x128xf32>
    %256 = arith.addf %254, %255 : vector<2x128xf32>
    %257 = vector.extract_strided_slice %244 {offsets = [0, 256], sizes = [2, 128], strides = [1, 1]} : vector<2x512xf32> to vector<2x128xf32>
    %258 = math.tanh %257 : vector<2x128xf32>
    %259 = vector.extract_strided_slice %244 {offsets = [0, 384], sizes = [2, 128], strides = [1, 1]} : vector<2x512xf32> to vector<2x128xf32>
    %260 = math.tanh %259 : vector<2x128xf32>
    %cst_109 = arith.constant 5.000000e-01 : f32
    %261 = vector.broadcast %cst_109 : f32 to vector<2x128xf32>
    %262 = arith.mulf %261, %260 : vector<2x128xf32>
    %cst_110 = arith.constant 5.000000e-01 : f32
    %263 = vector.broadcast %cst_110 : f32 to vector<2x128xf32>
    %264 = arith.addf %262, %263 : vector<2x128xf32>
    %265 = arith.mulf %256, %236 : vector<2x128xf32>
    %266 = arith.mulf %250, %258 : vector<2x128xf32>
    %267 = arith.addf %265, %266 : vector<2x128xf32>
    %268 = math.tanh %267 : vector<2x128xf32>
    %269 = arith.mulf %264, %268 : vector<2x128xf32>
    %c0_111 = arith.constant 0 : index
    %c0_112 = arith.constant 0 : index
    %270 = vector.load %arg4[%c0_111, %c0_112] : memref<128x4xf32, #tpu.memory_space<vmem>>, vector<128x4xf32>
    %cst_113 = arith.constant dense<0.000000e+00> : vector<2x4xf32>
    %271 = tpu.matmul %269, %270, %cst_113 {dimension_numbers = #tpu.dot_dimension_numbers<[1], [0], [0], [1], [0, 0, 1, 1], [], []>} : vector<2x128xf32>, vector<128x4xf32>, vector<2x4xf32> -> vector<2x4xf32>
    %c0_114 = arith.constant 0 : index
    %c0_115 = arith.constant 0 : index
    %272 = vector.load %arg5[%c0_114, %c0_115] : memref<1x4xf32, #tpu.memory_space<vmem>>, vector<1x4xf32>
    %273 = vector.broadcast %272 : vector<1x4xf32> to vector<2x4xf32>
    %274 = arith.addf %271, %273 : vector<2x4xf32>
    %c0_116 = arith.constant 0 : index
    %c0_117 = arith.constant 0 : index
    %275 = vector.load %arg6[%c0_116, %c0_117] : memref<2x4xf32, #tpu.memory_space<vmem>>, vector<2x4xf32>
    tpu.vector_store %arg6[%c0_116, %c0_117], %274 {strides = array<i32>} : memref<2x4xf32, #tpu.memory_space<vmem>>, vector<2x4xf32>,
    return
  }
}

</mosaic_0001>

<bundles_post_ra>
// kernel: tpu_custom_call.1
= control target key start
LH: loop header
LB: loop body
LE: loop exit
PB: predicated region body
PF: predicated region fallthrough
CT: control target
= control target key end

     0   :  { %11 = vsyncpa [#allocation4], 0  ;;  %s3241_s0 = inlined_call_operand.vmem [shape: f32[2,8,2], index: 0, kind: input, shape index: {}]   ;;  %s3242_s1 = inlined_call_operand.vmem [shape: f32[2,512], index: 1, kind: input, shape index: {}]   ;;  %s3243_s2 = inlined_call_operand.hbm [shape: bf16[128,512], index: 2, kind: input, shape index: {}]   ;;  %s3244_s3 = inlined_call_operand.vmem [shape: f32[1,512], index: 3, kind: input, shape index: {}]   ;;  %s3245_s4 = inlined_call_operand.vmem [shape: f32[128,4], index: 4, kind: input, shape index: {}]   ;;  %s3246_s5 = inlined_call_operand.vmem [shape: f32[1,4], index: 5, kind: input, shape index: {}]   ;;  %s3247_s6 = inlined_call_operand.hbm [shape: f32[2,4], index: 6, kind: output, shape index: {}]  }
   0x1   :  { %12 = vsyncpa [#allocation5], 0  ;;  %s2583_s21 = smov [#allocation3]  }
   0x2   :  { %s22_s22 = sshll.u32 %s2583_s21, 4  ;;  %s23_s22 = int_to_ptr.vmem [resolvable:$true] %s22_s22 }
   0x3   :  { %s2547_s23 = scalar_lea.vmem %s23_s22, 4096  ;;  %p2552_p1 = scmp.lt.s32.totalorder %s23_s22, %s23_s22 }
   0x4   :  { %p2548_p0 = scmp.ne.s32.totalorder %s23_s22, %s2547_s23  ;;  %p2553_p2 = scmp.lt.s32.totalorder %s2547_s23, %s2547_s23 }
   0x6   :  { %p2554_p3 = por %p2553_p2, %p2552_p1 }
   0x8   :  { %p2555_p4 = pnand %p2554_p3, %p2548_p0 }
   0xa   :  { %2558 = shalt.err (!%p2555_p4)
}
   0xb   :  { %s2584_s24 = smov 256   ;;  %s2585_s25 = smov 16  }
   0xc   :  { %28 = dma.hbm_to_vmem [thread:$0]  %s3243_s2, 4096, %s23_s22, [#allocation4], %s2584_s24, %s2584_s24, %s2585_s25  }
   0xd   :  { %2579 = dma.done.wait [#allocation4], 4096  }
   0xe   :  { %2580 = vsyncadd [#allocation4], 4294963200  ;;  %v43_v0 = vlaneseq  ;;  %v2586_v1 = vmov 1983009808   ;;  %v2587_v3 = vmov 0.0   ;;  %v2588_v5 = vmov 0  }
   0xf   :  { %v66_v2 = vunpack.c.l.s4 %v2586_v1  ;;  %158 = vmatprep.mubr.f32.mxu1 %v2587_v3  ;;  %668 = vmatprep.mubr.bf16.mxu0 %v2588_v5  ;;  %v40_v8 = vld [vmem:[%s3242_s1] sm:$0xff]  ;;  %vm85_vm0 = vcmask 1041408   ;;  %vm81_vm1 = vcmask 15360   ;;  %v2197_v22 = vld [vmem:[%s3241_s0 + $0x8] sm:$0xff]  ;;  %vm813_vm2 = vcmask 1041409   ;;  %s2591_s15 = smov [#allocation6]  }
  0x10   :  { %v2631_v4 = vshrl.u32 %v43_v0, 7  ;;  %v64_v9 = vcombine.high %v40_v8, %v40_v8  ;;  %v2638_v11 = vld [vmem:[#allocation3 + $0xe4] ss:$16 sps:$4 sm:$0xff]   ;;  %v2640_v12 = vld [vmem:[#allocation3 + $0xe0] ss:$16 sps:$4 sm:$0xff]   ;;  %vm2590_vm3 = vmmov 0  }
  0x11   :  { %v67_v6 = vunpack.c.0.s8 %v66_v2  ;;  %636 = vmatprep.subr.bf16.mxu0 %v2638_v11  ;;  %v2643_v15 = vld [vmem:[#allocation3 + $0xc4] ss:$16 sps:$4 sm:$0xff]   ;;  %v2651_v18 = vld [vmem:[#allocation3 + $0xc0] ss:$16 sps:$4 sm:$0xff]   ;;  %v2673_v23 = vld [vmem:[#allocation3 + $0xec] ss:$16 sps:$4 sm:$0xff]  }
  0x12   :  { %v39_v16 = vld [vmem:[%s3241_s0] sm:$0xff]  ;;  %637 = vmatpush1.bf16.msra.mxu0 %v2640_v12  ;;  %v2685_v26 = vld [vmem:[#allocation3 + $0xe8] ss:$16 sps:$4 sm:$0xff]   ;;  %v2687_v27 = vld [vmem:[#allocation3 + $0xcc] ss:$16 sps:$4 sm:$0xff]   ;;  %v45_v48 = vsub.s32 0, %v2631_v4 }
  0x13   :  { %v70_v7 = vsub.s32 %v67_v6, %v2631_v4  ;;  %638 = vmatprep.subr.bf16.mxu0 %v2643_v15  ;;  %v2654_v19 = vld [vmem:[#allocation3 + $0xa4] ss:$16 sps:$4 sm:$0xff]   ;;  %v2662_v20 = vld [vmem:[#allocation3 + $0xa0] ss:$16 sps:$4 sm:$0xff]   ;;  %v2698_v30 = vld [vmem:[#allocation3 + $0xc8] ss:$16 sps:$4 sm:$0xff]  }
  0x14   :  { %v2665_v21 = vld [vmem:[#allocation3 + $0x84] ss:$16 sps:$4 sm:$0xff]   ;;  %v2677_v24 = vld [vmem:[#allocation3 + $0x80] ss:$16 sps:$4 sm:$0xff]   ;;  %v2700_v31 = vld [vmem:[#allocation3 + $0xac] ss:$16 sps:$4 sm:$0xff]  }
  0x15   :  { %v71_v10 = vrot.slane %v40_v8, %v70_v7  ;;  %v78_v13 = vrot.slane %v64_v9, %v70_v7  ;;  %v2680_v25 = vld [vmem:[#allocation3 + $0x64] ss:$16 sps:$4 sm:$0xff]   ;;  %v2691_v28 = vld [vmem:[#allocation3 + $0x60] ss:$16 sps:$4 sm:$0xff]   ;;  %v2711_v34 = vld [vmem:[#allocation3 + $0xa8] ss:$16 sps:$4 sm:$0xff]  }
  0x16   :  { %639 = vmatpush1.bf16.msra.mxu0 %v2651_v18  ;;  %v2694_v29 = vld [vmem:[#allocation3 + $0x44] ss:$16 sps:$4 sm:$0xff]   ;;  %v2705_v32 = vld [vmem:[#allocation3 + $0x40] ss:$16 sps:$4 sm:$0xff]   ;;  %v2714_v35 = vld [vmem:[#allocation3 + $0x8c] ss:$16 sps:$4 sm:$0xff]  }
  0x17   :  { %v79_v14 = vcombine.high %v71_v10, %v71_v10  ;;  %v80_v17 = vcombine.high %v78_v13, %v78_v13  ;;  %640 = vmatprep.subr.bf16.mxu0 %v2654_v19  ;;  %v2708_v33 = vld [vmem:[#allocation3 + $0x24] ss:$16 sps:$4 sm:$0xff]   ;;  %v2717_v36 = vld [vmem:[#allocation3 + $0x20] ss:$16 sps:$4 sm:$0xff]   ;;  %v2723_v38 = vld [vmem:[#allocation3 + $0x88] ss:$16 sps:$4 sm:$0xff]  }
  0x18   :  { %v2720_v37 = vld [vmem:[#allocation3 + $0x4] ss:$16 sps:$4 sm:$0xff]   ;;  %v2726_v39 = vld [vmem:[#allocation3 + $0x6c] ss:$16 sps:$4 sm:$0xff]   ;;  %v2729_v40 = vld [vmem:[#allocation3] ss:$16 sps:$4 sm:$0xff]  }
  0x19   :  { %2191 = vmatprep.subr.msk.mxu1 %vm85_vm0, %v79_v14  ;;  %v2733_v41 = vld [vmem:[#allocation3 + $0x68] ss:$16 sps:$4 sm:$0xff]   ;;  %v2736_v42 = vld [vmem:[#allocation3 + $0x4c] ss:$16 sps:$4 sm:$0xff]   ;;  %v41_v49 = vld [vmem:[%s3244_s3] sm:$0xf] }
  0x1a   :  { %2192 = vmatpush1.msk.msra.mxu1 %vm85_vm0, %v71_v10  ;;  %641 = vmatpush1.bf16.msra.mxu0 %v2662_v20  ;;  %v2741_v43 = vld [vmem:[#allocation3 + $0x48] ss:$16 sps:$4 sm:$0xff]   ;;  %v2745_v44 = vld [vmem:[#allocation3 + $0x2c] ss:$16 sps:$4 sm:$0xff]   ;;  %v49_v50 = vsub.s32 1, %v2631_v4  ;;  %v46_v51 = vrot.slane %v41_v49, %v45_v48  ;;  %v53_v52 = vsub.s32 2, %v2631_v4 }
  0x1b   :  { %2193 = vmatmul.mubr.msk.f32.vlgmr.msra.gmra.mxu1 %vm81_vm1, %v39_v16  ;;  %2194 = vmatprep.subr.msk.mxu1 %vm85_vm0, %v80_v17  ;;  %v2751_v45 = vld [vmem:[#allocation3 + $0x28] ss:$16 sps:$4 sm:$0xff]   ;;  %v2754_v46 = vld [vmem:[#allocation3 + $0xc] ss:$16 sps:$4 sm:$0xff]   ;;  %v57_v54 = vsub.s32 3, %v2631_v4  ;;  %s2182_s16 = sshll.u32 %s2591_s15, 4  ;;  %s2183_s16 = int_to_ptr.vmem [resolvable:$true] %s2182_s16 }
  0x1c   :  { %2195 = vmatpush1.msk.msra.mxu1 %vm85_vm0, %v78_v13  ;;  %229 = vmatprep.mubr.f32.mxu1 %v2587_v3  ;;  %v2759_v47 = vld [vmem:[#allocation3 + $0x8] ss:$16 sps:$4 sm:$0xff]   ;;  %v50_v53 = vrot.slane %v41_v49, %v49_v50  ;;  %v54_v57 = vrot.slane %v41_v49, %v53_v52  ;;  %v243_v59 = vld [vmem:[%s3244_s3] sm:$0xf]  ;;  %vm2174_vm4 = vcmask 25600   ;;  %s2559_s17 = scalar_lea.vmem %s2183_s16, 32  ;;  %p2564_p6 = scmp.lt.s32.totalorder %s2183_s16, %s2183_s16 }
  0x1d   :  { %2198 = vmatprep.subr.msk.mxu1 %vm85_vm0, %v79_v14  ;;  %642 = vmatprep.subr.bf16.mxu0 %v2665_v21  ;;  %v58_v61 = vrot.slane %v41_v49, %v57_v54  ;;  %v248_v0 = vrot.slane %v243_v59, %v45_v48  ;;  %v252_v6 = vrot.slane %v243_v59, %v49_v50  ;;  %v2589_v50 = vmov 1966171168   ;;  %p2560_p5 = scmp.ne.s32.totalorder %s2183_s16, %s2559_s17  ;;  %p2565_p7 = scmp.lt.s32.totalorder %s2559_s17, %s2559_s17 }
  0x1e   :  { %643 = vmatpush1.bf16.msra.mxu0 %v2677_v24  ;;  %v256_v9 = vrot.slane %v243_v59, %v53_v52  ;;  %v260_v14 = vrot.slane %v243_v59, %v57_v54 }
  0x1f   :  { %2196 = vmatmul.mubr.msk.f32.vlgmr.msra.gmra.mxu1 %vm81_vm1, %v39_v16  ;;  %644 = vmatprep.subr.bf16.mxu0 %v2680_v25  ;;  %p2566_p8 = por %p2565_p7, %p2564_p6 }
  0x20   :  { %2199 = vmatpush1.msk.msra.mxu1 %vm85_vm0, %v71_v10  ;;  %358 = vmatprep.mubr.f32.mxu1 %v2587_v3 }
  0x21   :  { %2201 = vmatprep.subr.msk.mxu1 %vm85_vm0, %v80_v17  ;;  %p2567_p9 = pnand %p2566_p8, %p2560_p5 }
  0x22   :  { %645 = vmatpush1.bf16.msra.mxu0 %v2691_v28 }
  0x23   :  { %2200 = vmatmul.mubr.msk.f32.vlgmr.msra.gmra.mxu1 %vm81_vm1, %v2197_v22  ;;  %646 = vmatprep.subr.bf16.mxu0 %v2694_v29 }
  0x24   :  { %2202 = vmatpush1.msk.msra.mxu1 %vm85_vm0, %v78_v13  ;;  %429 = vmatprep.mubr.f32.mxu1 %v2587_v3 }
  0x25   :  { %677 = vmatprep.subr.bf16.mxu1 %v2673_v23 }
  0x26   :  { %647 = vmatpush1.bf16.msra.mxu0 %v2705_v32 }
  0x27   :  { %2203 = vmatmul.mubr.msk.f32.vlgmr.msra.gmra.mxu1 %vm81_vm1, %v2197_v22  ;;  %648 = vmatprep.subr.bf16.mxu0 %v2708_v33 }
  0x28   :  { %678 = vmatpush1.bf16.msra.mxu1 %v2685_v26  ;;  %709 = vmatprep.mubr.bf16.mxu1 %v2588_v5 }
  0x29   :  { %679 = vmatprep.subr.bf16.mxu1 %v2687_v27 }
  0x2a   :  { %649 = vmatpush1.bf16.msra.mxu0 %v2717_v36 }
  0x2b   :  { %650 = vmatprep.subr.bf16.mxu0 %v2720_v37 }
  0x2c   :  { %680 = vmatpush1.bf16.msra.mxu1 %v2698_v30 }
  0x2d   :  { %681 = vmatprep.subr.bf16.mxu1 %v2700_v31 }
  0x2e   :  { %651 = vmatpush1.bf16.msra.mxu0 %v2729_v40 }
  0x2f   :  { %817 = vmatprep.subr.bf16.mxu0 %v2638_v11 }
  0x30   :  { %682 = vmatpush1.bf16.msra.mxu1 %v2711_v34 }
  0x31   :  { %683 = vmatprep.subr.bf16.mxu1 %v2714_v35  ;;  %669 = vmatmul.mubr.bf16.vlgmr.msra.gmra.mxu0 %v2588_v5 }
  0x32   :  { %818 = vmatpush1.bf16.msra.mxu0 %v2640_v12  ;;  %849 = vmatprep.mubr.bf16.mxu0 %v2588_v5 }
  0x33   :  { %819 = vmatprep.subr.bf16.mxu0 %v2643_v15 }
  0x34   :  { %684 = vmatpush1.bf16.msra.mxu1 %v2723_v38 }
  0x35   :  { %685 = vmatprep.subr.bf16.mxu1 %v2726_v39 }
  0x36   :  { %820 = vmatpush1.bf16.msra.mxu0 %v2651_v18 }
  0x37   :  { %821 = vmatprep.subr.bf16.mxu0 %v2654_v19 }
  0x38   :  { %686 = vmatpush1.bf16.msra.mxu1 %v2733_v41 }
  0x39   :  { %687 = vmatprep.subr.bf16.mxu1 %v2736_v42 }
  0x3a   :  { %822 = vmatpush1.bf16.msra.mxu0 %v2662_v20 }
  0x3b   :  { %823 = vmatprep.subr.bf16.mxu0 %v2665_v21 }
  0x3c   :  { %688 = vmatpush1.bf16.msra.mxu1 %v2741_v43 }
  0x3d   :  { %689 = vmatprep.subr.bf16.mxu1 %v2745_v44 }
  0x3e   :  { %824 = vmatpush1.bf16.msra.mxu0 %v2677_v24 }
  0x3f   :  { %825 = vmatprep.subr.bf16.mxu0 %v2680_v25 }
  0x40   :  { %690 = vmatpush1.bf16.msra.mxu1 %v2751_v45 }
  0x41   :  { %691 = vmatprep.subr.bf16.mxu1 %v2754_v46 }
  0x42   :  { %826 = vmatpush1.bf16.msra.mxu0 %v2691_v28 }
  0x43   :  { %827 = vmatprep.subr.bf16.mxu0 %v2694_v29 }
  0x44   :  { %692 = vmatpush1.bf16.msra.mxu1 %v2759_v47 }
  0x45   :  { %858 = vmatprep.subr.bf16.mxu1 %v2673_v23 }
  0x46   :  { %828 = vmatpush1.bf16.msra.mxu0 %v2705_v32 }
  0x47   :  { %710 = vmatmul.mubr.bf16.vlgmr.msra.gmra.mxu1 %v2588_v5  ;;  %829 = vmatprep.subr.bf16.mxu0 %v2708_v33 }
  0x48   :  { %859 = vmatpush1.bf16.msra.mxu1 %v2685_v26  ;;  %890 = vmatprep.mubr.bf16.mxu1 %v2588_v5 }
  0x49   :  { %860 = vmatprep.subr.bf16.mxu1 %v2687_v27 }
  0x4a   :  { %830 = vmatpush1.bf16.msra.mxu0 %v2717_v36 }
  0x4b   :  { %831 = vmatprep.subr.bf16.mxu0 %v2720_v37 }
  0x4c   :  { %861 = vmatpush1.bf16.msra.mxu1 %v2698_v30 }
  0x4d   :  { %862 = vmatprep.subr.bf16.mxu1 %v2700_v31 }
  0x4e   :  { %832 = vmatpush1.bf16.msra.mxu0 %v2729_v40 }
  0x4f   :  { %997 = vmatprep.subr.bf16.mxu0 %v2638_v11 }
  0x50   :  { %863 = vmatpush1.bf16.msra.mxu1 %v2711_v34 }
  0x51   :  { %864 = vmatprep.subr.bf16.mxu1 %v2714_v35 }
  0x54   :  { %865 = vmatpush1.bf16.msra.mxu1 %v2723_v38 }
  0x55   :  { %866 = vmatprep.subr.bf16.mxu1 %v2726_v39 }
  0x58   :  { %867 = vmatpush1.bf16.msra.mxu1 %v2733_v41 }
  0x59   :  { %868 = vmatprep.subr.bf16.mxu1 %v2736_v42 }
  0x5c   :  { %869 = vmatpush1.bf16.msra.mxu1 %v2741_v43 }
  0x5d   :  { %870 = vmatprep.subr.bf16.mxu1 %v2745_v44 }
  0x60   :  { %871 = vmatpush1.bf16.msra.mxu1 %v2751_v45 }
  0x61   :  { %872 = vmatprep.subr.bf16.mxu1 %v2754_v46 }
  0x64   :  { %873 = vmatpush1.bf16.msra.mxu1 %v2759_v47 }
  0x65   :  { %1038 = vmatprep.subr.bf16.mxu1 %v2673_v23 }
  0xdb   :  { %v160_v55 = vpop.f32.mrf.mxu1 }
  0xdc   :  { %v161_v56 = vadd.f32 %v160_v55, %v46_v51 }
  0xdd   :  { %v162_v58 = vpop.f32.mrf.mxu1 }
  0xde   :  { %236 = vst [vmem:[#allocation2] sm:$0xff] %v161_v56  ;;  %v163_v60 = vadd.f32 %v162_v58, %v50_v53  ;;  %v725_v56 = vunpack.c.l.s4 %v2589_v50 }
  0xdf   :  { %v231_v62 = vpop.f32.mrf.mxu1 }
  0xe0   :  { %237 = vst [vmem:[#allocation2 + $0x8] sm:$0xff] %v163_v60  ;;  %v232_v63 = vadd.f32 %v231_v62, %v54_v57  ;;  %v726_v57 = vunpack.c.0.s8 %v725_v56 }
  0xe1   :  { %v233_v1 = vpop.f32.mrf.mxu1 }
  0xe2   :  { %238 = vst [vmem:[#allocation2 + $0x10] sm:$0xff] %v232_v63  ;;  %v234_v2 = vadd.f32 %v233_v1, %v58_v61  ;;  %v2805_v52 = vsub.s32 %v726_v57, %v2631_v4 }
  0xe3   :  { %v360_v7 = vpop.f32.mrf.mxu1 }
  0xe4   :  { %239 = vst [vmem:[#allocation2 + $0x18] sm:$0xff] %v234_v2  ;;  %v361_v8 = vadd.f32 %v360_v7, %v248_v0 }
  0xe5   :  { %v362_v10 = vpop.f32.mrf.mxu1 }
  0xe6   :  { %437 = vst [vmem:[#allocation2 + $0x20] sm:$0xff] %v361_v8  ;;  %v363_v13 = vadd.f32 %v362_v10, %v252_v6 }
  0xe7   :  { %v431_v16 = vpop.f32.mrf.mxu1 }
  0xe8   :  { %438 = vst [vmem:[#allocation2 + $0x28] sm:$0xff] %v363_v13  ;;  %v432_v17 = vadd.f32 %v431_v16, %v256_v9 }
  0xe9   :  { %v433_v22 = vpop.f32.mrf.mxu1 }
  0xea   :  { %439 = vst [vmem:[#allocation2 + $0x30] sm:$0xff] %v432_v17  ;;  %v434_v49 = vadd.f32 %v433_v22, %v260_v14 }
  0xeb   :  { %v441_v8 = vld [vmem:[#allocation2] ss:$8 sm:$0xf] }
  0xec   :  { %440 = vst [vmem:[#allocation2 + $0x38] sm:$0xff] %v434_v49 }
  0xf1   :  { %v670_v48 = vpop.f32.mrf.mxu0 }
  0xf3   :  { %v672_v51 = vpop.f32.mrf.mxu0  ;;  %v443_v9 = vld [vmem:[#allocation2 + $0x20] ss:$8 sm:$0xf] }
  0xf4   :  { %v722_v60 = vcombine.low %v670_v48, %v672_v51 }
  0xf5   :  { %v674_v53 = vpop.f32.mrf.mxu0 }
  0xf6   :  { %v730_v62 = vrot.slane %v722_v60, %v2805_v52 }
  0xf7   :  { %v675_v55 = vpop.f32.mrf.mxu0 }
 0x107   :  { %v711_v58 = vpop.f32.mrf.mxu1 }
 0x109   :  { %v713_v54 = vpop.f32.mrf.mxu1 }
 0x10a   :  { %v723_v59 = vcombine.low %v711_v58, %v713_v54 }
 0x10b   :  { %v715_v61 = vpop.f32.mrf.mxu1 }
 0x10c   :  { %v737_v63 = vrot.slane %v723_v59, %v2805_v52 }
 0x10d   :  { %v716_v0 = vpop.f32.mrf.mxu1 }
 0x10e   :  { %v738_v1 = vcombine.low %v730_v62, %v737_v63  ;;  %v739_v2 = vcombine.high %v730_v62, %v737_v63 }
 0x110   :  { %v746_v6 = vrot.slane %v738_v1, %v2805_v52  ;;  %v753_v7 = vrot.slane %v739_v2, %v2805_v52 }
 0x112   :  { %v756_v10 = vadd.f32 %v746_v6, %v441_v8  ;;  %v757_v4 = vadd.f32 %v753_v7, %v443_v9 }
 0x114   :  { %2347 = vtanh.f32 %v756_v10  ;;  %v766_v13 = vrot.slane %v756_v10, 1  ;;  %v767_v14 = vrot.slane %v757_v4, 1  ;;  %v776_v16 = vrot.slane %v756_v10, 2 }
 0x115   :  { %2349 = vtanh.f32 %v757_v4  ;;  %v777_v17 = vrot.slane %v757_v4, 2  ;;  %v782_v22 = vrot.slane %v756_v10, 3  ;;  %v783_v48 = vrot.slane %v757_v4, 3 }
 0x116   :  { %2351 = vtanh.f32 %v766_v13 }
 0x117   :  { %2353 = vtanh.f32 %v767_v14 }
 0x118   :  { %2355 = vtanh.f32 %v776_v16 }
 0x119   :  { %2357 = vtanh.f32 %v777_v17 }
 0x11a   :  { %2359 = vtanh.f32 %v782_v22 }
 0x11b   :  { %2361 = vtanh.f32 %v783_v48 }
 0x121   :  { %v2348_v49 = vpop.eup %2347 }
 0x122   :  { %v2350_v51 = vpop.eup %2349  ;;  %v760_v53 = vmul.f32 0.5, %v2348_v49 }
 0x123   :  { %v2352_v55 = vpop.eup %2351  ;;  %v761_v50 = vmul.f32 0.5, %v2350_v51 }
 0x124   :  { %v2354_v56 = vpop.eup %2353  ;;  %v762_v57 = vadd.f32 0.5, %v760_v53  ;;  %v772_v58 = vmul.f32 0.5, %v2352_v55 }
 0x125   :  { %v763_v60 = vadd.f32 0.5, %v761_v50  ;;  %v773_v54 = vmul.f32 0.5, %v2354_v56  ;;  %v2356_v61 = vpop.eup %2355 }
 0x126   :  { %v774_v59 = vadd.f32 0.5, %v772_v58  ;;  %v2358_v63 = vpop.eup %2357  ;;  %v794_v1 = vmul.f32 %v2356_v61, %v762_v57 }
 0x127   :  { %v775_v62 = vadd.f32 0.5, %v773_v54  ;;  %v795_v6 = vmul.f32 %v2358_v63, %v763_v60  ;;  %v2360_v9 = vpop.eup %2359 }
 0x128   :  { %v792_v0 = vmul.f32 0.0, %v774_v59  ;;  %v2362_v10 = vpop.eup %2361  ;;  %v788_v4 = vmul.f32 0.5, %v2360_v9 }
 0x129   :  { %v793_v2 = vmul.f32 0.0, %v775_v62  ;;  %v789_v13 = vmul.f32 0.5, %v2362_v10 }
 0x12a   :  { %v2811_v7 = vadd.f32 %v794_v1, %v792_v0  ;;  %v790_v14 = vadd.f32 0.5, %v788_v4 }
 0x12b   :  { %v2813_v8 = vadd.f32 %v795_v6, %v793_v2  ;;  %v791_v17 = vadd.f32 0.5, %v789_v13 }
 0x12c   :  { %2363 = vtanh.f32 %v2811_v7 }
 0x12d   :  { %2365 = vtanh.f32 %v2813_v8 }
 0x139   :  { %v2364_v16 = vpop.eup %2363 }
 0x13a   :  { %v2366_v22 = vpop.eup %2365  ;;  %v800_v49 = vmul.f32 %v2364_v16, %v790_v14 }
 0x13b   :  { %v801_v48 = vmul.f32 %v2366_v22, %v791_v17  ;;  %v803_v17 = vld [vmem:[#allocation2 + $0x1] ss:$8 sm:$0xf] }
 0x13c   :  { %v806_v51 = vpack.c.bf16 %v800_v49, %v800_v49  ;;  %v805_v22 = vld [vmem:[#allocation2 + $0x21] ss:$8 sm:$0xf] }
 0x13d   :  { %v807_v53 = vpack.c.bf16 %v801_v48, %v801_v48 }
 0x13e   :  { %v810_v50 = vunpack.c.l.b16 %v806_v51 }
 0x13f   :  { %v811_v55 = vunpack.c.l.b16 %v807_v53 }
 0x141   :  { %v812_v56 = vrot.slane %v811_v55, 7 }
 0x143   :  { %v814_v57 = vsel %vm813_vm2, %v812_v56, %v810_v50 }
 0x144   :  { %v815_v58 = vpack.c.b16 %v814_v57, %v814_v57 }
 0x146   :  { %850 = vmatmul.mubr.bf16.vlgmr.msra.gmra.mxu0 %v815_v58  ;;  %891 = vmatmul.mubr.bf16.vlgmr.msra.gmra.mxu1 %v815_v58 }
 0x147   :  { %998 = vmatpush1.bf16.msra.mxu0 %v2640_v12  ;;  %1039 = vmatpush1.bf16.msra.mxu1 %v2685_v26 }
 0x148   :  { %999 = vmatprep.subr.bf16.mxu0 %v2643_v15  ;;  %1040 = vmatprep.subr.bf16.mxu1 %v2687_v27 }
 0x149   :  { %1029 = vmatprep.mubr.bf16.mxu0 %v2588_v5  ;;  %1070 = vmatprep.mubr.bf16.mxu1 %v2588_v5 }
 0x14b   :  { %1000 = vmatpush1.bf16.msra.mxu0 %v2651_v18  ;;  %1041 = vmatpush1.bf16.msra.mxu1 %v2698_v30 }
 0x14c   :  { %1001 = vmatprep.subr.bf16.mxu0 %v2654_v19  ;;  %1042 = vmatprep.subr.bf16.mxu1 %v2700_v31 }
 0x14f   :  { %1002 = vmatpush1.bf16.msra.mxu0 %v2662_v20  ;;  %1043 = vmatpush1.bf16.msra.mxu1 %v2711_v34 }
 0x150   :  { %1003 = vmatprep.subr.bf16.mxu0 %v2665_v21  ;;  %1044 = vmatprep.subr.bf16.mxu1 %v2714_v35 }
 0x153   :  { %1004 = vmatpush1.bf16.msra.mxu0 %v2677_v24  ;;  %1045 = vmatpush1.bf16.msra.mxu1 %v2723_v38 }
 0x154   :  { %1005 = vmatprep.subr.bf16.mxu0 %v2680_v25  ;;  %1046 = vmatprep.subr.bf16.mxu1 %v2726_v39 }
 0x157   :  { %1006 = vmatpush1.bf16.msra.mxu0 %v2691_v28  ;;  %1047 = vmatpush1.bf16.msra.mxu1 %v2733_v41 }
 0x158   :  { %1007 = vmatprep.subr.bf16.mxu0 %v2694_v29  ;;  %1048 = vmatprep.subr.bf16.mxu1 %v2736_v42 }
 0x15b   :  { %1008 = vmatpush1.bf16.msra.mxu0 %v2705_v32  ;;  %1049 = vmatpush1.bf16.msra.mxu1 %v2741_v43 }
 0x15c   :  { %1009 = vmatprep.subr.bf16.mxu0 %v2708_v33  ;;  %1050 = vmatprep.subr.bf16.mxu1 %v2745_v44 }
 0x15f   :  { %1010 = vmatpush1.bf16.msra.mxu0 %v2717_v36  ;;  %1051 = vmatpush1.bf16.msra.mxu1 %v2751_v45 }
 0x160   :  { %1011 = vmatprep.subr.bf16.mxu0 %v2720_v37  ;;  %1052 = vmatprep.subr.bf16.mxu1 %v2754_v46 }
 0x163   :  { %1012 = vmatpush1.bf16.msra.mxu0 %v2729_v40  ;;  %1053 = vmatpush1.bf16.msra.mxu1 %v2759_v47 }
 0x164   :  { %1177 = vmatprep.subr.bf16.mxu0 %v2638_v11  ;;  %1218 = vmatprep.subr.bf16.mxu1 %v2673_v23 }
 0x206   :  { %v851_v60 = vpop.f32.mrf.mxu0  ;;  %v892_v54 = vpop.f32.mrf.mxu1 }
 0x208   :  { %v853_v59 = vpop.f32.mrf.mxu0  ;;  %v894_v61 = vpop.f32.mrf.mxu1 }
 0x209   :  { %v903_v62 = vcombine.low %v851_v60, %v853_v59  ;;  %v904_v63 = vcombine.low %v892_v54, %v894_v61 }
 0x20a   :  { %v855_v0 = vpop.f32.mrf.mxu0  ;;  %v896_v1 = vpop.f32.mrf.mxu1 }
 0x20b   :  { %v911_v2 = vrot.slane %v903_v62, %v2805_v52  ;;  %v918_v6 = vrot.slane %v904_v63, %v2805_v52 }
 0x20c   :  { %v856_v9 = vpop.f32.mrf.mxu0  ;;  %v897_v10 = vpop.f32.mrf.mxu1 }
 0x20d   :  { %v919_v4 = vcombine.low %v911_v2, %v918_v6  ;;  %v920_v13 = vcombine.high %v911_v2, %v918_v6 }
 0x20f   :  { %v927_v14 = vrot.slane %v919_v4, %v2805_v52  ;;  %v934_v16 = vrot.slane %v920_v13, %v2805_v52 }
 0x211   :  { %v937_v49 = vadd.f32 %v927_v14, %v803_v17  ;;  %v938_v48 = vadd.f32 %v934_v16, %v805_v22 }
 0x213   :  { %2367 = vtanh.f32 %v937_v49  ;;  %v947_v51 = vrot.slane %v937_v49, 1  ;;  %v948_v53 = vrot.slane %v938_v48, 1  ;;  %v957_v55 = vrot.slane %v937_v49, 2 }
 0x214   :  { %2369 = vtanh.f32 %v938_v48  ;;  %v958_v50 = vrot.slane %v938_v48, 2  ;;  %v963_v56 = vrot.slane %v937_v49, 3  ;;  %v964_v58 = vrot.slane %v938_v48, 3 }
 0x215   :  { %2371 = vtanh.f32 %v947_v51 }
 0x216   :  { %2373 = vtanh.f32 %v948_v53 }
 0x217   :  { %2375 = vtanh.f32 %v957_v55 }
 0x218   :  { %2377 = vtanh.f32 %v958_v50 }
 0x219   :  { %2379 = vtanh.f32 %v963_v56 }
 0x21a   :  { %2381 = vtanh.f32 %v964_v58 }
 0x220   :  { %v2368_v57 = vpop.eup %2367 }
 0x221   :  { %v2370_v60 = vpop.eup %2369  ;;  %v941_v54 = vmul.f32 0.5, %v2368_v57 }
 0x222   :  { %v2372_v59 = vpop.eup %2371  ;;  %v942_v61 = vmul.f32 0.5, %v2370_v60 }
 0x223   :  { %v2374_v62 = vpop.eup %2373  ;;  %v943_v63 = vadd.f32 0.5, %v941_v54  ;;  %v953_v0 = vmul.f32 0.5, %v2372_v59 }
 0x224   :  { %v944_v1 = vadd.f32 0.5, %v942_v61  ;;  %v954_v2 = vmul.f32 0.5, %v2374_v62  ;;  %v2376_v9 = vpop.eup %2375 }
 0x225   :  { %v955_v6 = vadd.f32 0.5, %v953_v0  ;;  %v2378_v4 = vpop.eup %2377  ;;  %v975_v14 = vmul.f32 %v2376_v9, %v943_v63 }
 0x226   :  { %v956_v10 = vadd.f32 0.5, %v954_v2  ;;  %v976_v17 = vmul.f32 %v2378_v4, %v944_v1  ;;  %v2380_v48 = vpop.eup %2379 }
 0x227   :  { %v973_v13 = vmul.f32 %v955_v6, %v2811_v7  ;;  %v2382_v51 = vpop.eup %2381  ;;  %v969_v53 = vmul.f32 0.5, %v2380_v48 }
 0x228   :  { %v974_v16 = vmul.f32 %v956_v10, %v2813_v8  ;;  %v970_v55 = vmul.f32 0.5, %v2382_v51 }
 0x229   :  { %v2858_v22 = vadd.f32 %v975_v14, %v973_v13  ;;  %v971_v50 = vadd.f32 0.5, %v969_v53 }
 0x22a   :  { %v2860_v49 = vadd.f32 %v976_v17, %v974_v16  ;;  %v972_v57 = vadd.f32 0.5, %v970_v55 }
 0x22b   :  { %2383 = vtanh.f32 %v2858_v22 }
 0x22c   :  { %2385 = vtanh.f32 %v2860_v49 }
 0x238   :  { %v2384_v56 = vpop.eup %2383 }
 0x239   :  { %v2386_v7 = vpop.eup %2385  ;;  %v981_v58 = vmul.f32 %v2384_v56, %v971_v50  ;;  %v984_v56 = vld [vmem:[#allocation2 + $0x2] ss:$8 sm:$0xf] }
 0x23a   :  { %v982_v60 = vmul.f32 %v2386_v7, %v972_v57  ;;  %v986_v57 = vld [vmem:[#allocation2 + $0x22] ss:$8 sm:$0xf] }
 0x23b   :  { %v987_v8 = vpack.c.bf16 %v981_v58, %v981_v58 }
 0x23c   :  { %v988_v54 = vpack.c.bf16 %v982_v60, %v982_v60 }
 0x23d   :  { %v991_v61 = vunpack.c.l.b16 %v987_v8 }
 0x23e   :  { %v992_v59 = vunpack.c.l.b16 %v988_v54 }
 0x240   :  { %v993_v62 = vrot.slane %v992_v59, 7 }
 0x242   :  { %v994_v63 = vsel %vm813_vm2, %v993_v62, %v991_v61 }
 0x243   :  { %v995_v0 = vpack.c.b16 %v994_v63, %v994_v63 }
 0x245   :  { %1030 = vmatmul.mubr.bf16.vlgmr.msra.gmra.mxu0 %v995_v0  ;;  %1071 = vmatmul.mubr.bf16.vlgmr.msra.gmra.mxu1 %v995_v0 }
 0x246   :  { %1178 = vmatpush1.bf16.msra.mxu0 %v2640_v12  ;;  %1219 = vmatpush1.bf16.msra.mxu1 %v2685_v26 }
 0x247   :  { %1179 = vmatprep.subr.bf16.mxu0 %v2643_v15  ;;  %1220 = vmatprep.subr.bf16.mxu1 %v2687_v27 }
 0x248   :  { %1209 = vmatprep.mubr.bf16.mxu0 %v2588_v5  ;;  %1250 = vmatprep.mubr.bf16.mxu1 %v2588_v5 }
 0x24a   :  { %1180 = vmatpush1.bf16.msra.mxu0 %v2651_v18  ;;  %1221 = vmatpush1.bf16.msra.mxu1 %v2698_v30 }
 0x24b   :  { %1181 = vmatprep.subr.bf16.mxu0 %v2654_v19  ;;  %1222 = vmatprep.subr.bf16.mxu1 %v2700_v31 }
 0x24e   :  { %1182 = vmatpush1.bf16.msra.mxu0 %v2662_v20  ;;  %1223 = vmatpush1.bf16.msra.mxu1 %v2711_v34 }
 0x24f   :  { %1183 = vmatprep.subr.bf16.mxu0 %v2665_v21  ;;  %1224 = vmatprep.subr.bf16.mxu1 %v2714_v35 }
 0x252   :  { %1184 = vmatpush1.bf16.msra.mxu0 %v2677_v24  ;;  %1225 = vmatpush1.bf16.msra.mxu1 %v2723_v38 }
 0x253   :  { %1185 = vmatprep.subr.bf16.mxu0 %v2680_v25  ;;  %1226 = vmatprep.subr.bf16.mxu1 %v2726_v39 }
 0x256   :  { %1186 = vmatpush1.bf16.msra.mxu0 %v2691_v28  ;;  %1227 = vmatpush1.bf16.msra.mxu1 %v2733_v41 }
 0x257   :  { %1187 = vmatprep.subr.bf16.mxu0 %v2694_v29  ;;  %1228 = vmatprep.subr.bf16.mxu1 %v2736_v42 }
 0x25a   :  { %1188 = vmatpush1.bf16.msra.mxu0 %v2705_v32  ;;  %1229 = vmatpush1.bf16.msra.mxu1 %v2741_v43 }
 0x25b   :  { %1189 = vmatprep.subr.bf16.mxu0 %v2708_v33  ;;  %1230 = vmatprep.subr.bf16.mxu1 %v2745_v44 }
 0x25e   :  { %1190 = vmatpush1.bf16.msra.mxu0 %v2717_v36  ;;  %1231 = vmatpush1.bf16.msra.mxu1 %v2751_v45 }
 0x25f   :  { %1191 = vmatprep.subr.bf16.mxu0 %v2720_v37  ;;  %1232 = vmatprep.subr.bf16.mxu1 %v2754_v46 }
 0x262   :  { %1192 = vmatpush1.bf16.msra.mxu0 %v2729_v40  ;;  %1233 = vmatpush1.bf16.msra.mxu1 %v2759_v47 }
 0x263   :  { %1357 = vmatprep.subr.bf16.mxu0 %v2638_v11  ;;  %1398 = vmatprep.subr.bf16.mxu1 %v2673_v23 }
 0x305   :  { %v1031_v1 = vpop.f32.mrf.mxu0  ;;  %v1072_v2 = vpop.f32.mrf.mxu1 }
 0x307   :  { %v1033_v6 = vpop.f32.mrf.mxu0  ;;  %v1074_v9 = vpop.f32.mrf.mxu1 }
 0x308   :  { %v1083_v10 = vcombine.low %v1031_v1, %v1033_v6  ;;  %v1084_v4 = vcombine.low %v1072_v2, %v1074_v9 }
 0x309   :  { %v1035_v13 = vpop.f32.mrf.mxu0  ;;  %v1076_v14 = vpop.f32.mrf.mxu1 }
 0x30a   :  { %v1091_v16 = vrot.slane %v1083_v10, %v2805_v52  ;;  %v1098_v17 = vrot.slane %v1084_v4, %v2805_v52 }
 0x30b   :  { %v1036_v48 = vpop.f32.mrf.mxu0  ;;  %v1077_v51 = vpop.f32.mrf.mxu1 }
 0x30c   :  { %v1099_v53 = vcombine.low %v1091_v16, %v1098_v17  ;;  %v1100_v55 = vcombine.high %v1091_v16, %v1098_v17 }
 0x30e   :  { %v1107_v11 = vrot.slane %v1099_v53, %v2805_v52  ;;  %v1114_v50 = vrot.slane %v1100_v55, %v2805_v52 }
 0x310   :  { %v1117_v7 = vadd.f32 %v1107_v11, %v984_v56  ;;  %v1118_v58 = vadd.f32 %v1114_v50, %v986_v57 }
 0x312   :  { %2387 = vtanh.f32 %v1117_v7  ;;  %v1127_v60 = vrot.slane %v1117_v7, 1  ;;  %v1128_v8 = vrot.slane %v1118_v58, 1  ;;  %v1137_v54 = vrot.slane %v1117_v7, 2 }
 0x313   :  { %2389 = vtanh.f32 %v1118_v58  ;;  %v1138_v59 = vrot.slane %v1118_v58, 2  ;;  %v1143_v61 = vrot.slane %v1117_v7, 3  ;;  %v1144_v63 = vrot.slane %v1118_v58, 3 }
 0x314   :  { %2391 = vtanh.f32 %v1127_v60 }
 0x315   :  { %2393 = vtanh.f32 %v1128_v8 }
 0x316   :  { %2395 = vtanh.f32 %v1137_v54 }
 0x317   :  { %2397 = vtanh.f32 %v1138_v59 }
 0x318   :  { %2399 = vtanh.f32 %v1143_v61 }
 0x319   :  { %2401 = vtanh.f32 %v1144_v63 }
 0x31f   :  { %v2388_v62 = vpop.eup %2387 }
 0x320   :  { %v2390_v0 = vpop.eup %2389  ;;  %v1121_v1 = vmul.f32 0.5, %v2388_v62 }
 0x321   :  { %v2392_v2 = vpop.eup %2391  ;;  %v1122_v6 = vmul.f32 0.5, %v2390_v0 }
 0x322   :  { %v2394_v9 = vpop.eup %2393  ;;  %v1123_v10 = vadd.f32 0.5, %v1121_v1  ;;  %v1133_v4 = vmul.f32 0.5, %v2392_v2 }
 0x323   :  { %v1124_v13 = vadd.f32 0.5, %v1122_v6  ;;  %v1134_v14 = vmul.f32 0.5, %v2394_v9  ;;  %v2396_v17 = vpop.eup %2395 }
 0x324   :  { %v1135_v16 = vadd.f32 0.5, %v1133_v4  ;;  %v2398_v51 = vpop.eup %2397  ;;  %v1155_v55 = vmul.f32 %v2396_v17, %v1123_v10 }
 0x325   :  { %v1136_v48 = vadd.f32 0.5, %v1134_v14  ;;  %v1156_v50 = vmul.f32 %v2398_v51, %v1124_v13  ;;  %v2400_v7 = vpop.eup %2399 }
 0x326   :  { %v1153_v53 = vmul.f32 %v1135_v16, %v2858_v22  ;;  %v2402_v58 = vpop.eup %2401  ;;  %v1149_v60 = vmul.f32 0.5, %v2400_v7 }
 0x327   :  { %v1154_v11 = vmul.f32 %v1136_v48, %v2860_v49  ;;  %v1150_v8 = vmul.f32 0.5, %v2402_v58 }
 0x328   :  { %v2905_v56 = vadd.f32 %v1155_v55, %v1153_v53  ;;  %v1151_v54 = vadd.f32 0.5, %v1149_v60 }
 0x329   :  { %v2907_v57 = vadd.f32 %v1156_v50, %v1154_v11  ;;  %v1152_v61 = vadd.f32 0.5, %v1150_v8 }
 0x32a   :  { %2403 = vtanh.f32 %v2905_v56 }
 0x32b   :  { %2405 = vtanh.f32 %v2907_v57 }
 0x337   :  { %v2404_v59 = vpop.eup %2403 }
 0x338   :  { %v2406_v22 = vpop.eup %2405  ;;  %v1161_v62 = vmul.f32 %v2404_v59, %v1151_v54 }
 0x339   :  { %v1162_v63 = vmul.f32 %v2406_v22, %v1152_v61 }
 0x33a   :  { %v1167_v49 = vpack.c.bf16 %v1161_v62, %v1161_v62 }
 0x33b   :  { %v1168_v0 = vpack.c.bf16 %v1162_v63, %v1162_v63 }
 0x33c   :  { %v1171_v2 = vunpack.c.l.b16 %v1167_v49 }
 0x33d   :  { %v1172_v1 = vunpack.c.l.b16 %v1168_v0 }
 0x33f   :  { %v1173_v6 = vrot.slane %v1172_v1, 7 }
 0x341   :  { %v1174_v9 = vsel %vm813_vm2, %v1173_v6, %v1171_v2 }
 0x342   :  { %v1175_v10 = vpack.c.b16 %v1174_v9, %v1174_v9 }
 0x344   :  { %1210 = vmatmul.mubr.bf16.vlgmr.msra.gmra.mxu0 %v1175_v10  ;;  %1251 = vmatmul.mubr.bf16.vlgmr.msra.gmra.mxu1 %v1175_v10 }
 0x345   :  { %1358 = vmatpush1.bf16.msra.mxu0 %v2640_v12  ;;  %1399 = vmatpush1.bf16.msra.mxu1 %v2685_v26  ;;  %v2944_v12 = vld [vmem:[#allocation3 + $0xe4] ss:$16 sps:$4 sm:$0xff]  }
 0x346   :  { %1359 = vmatprep.subr.bf16.mxu0 %v2643_v15  ;;  %1400 = vmatprep.subr.bf16.mxu1 %v2687_v27 }
 0x347   :  { %1389 = vmatprep.mubr.bf16.mxu0 %v2588_v5  ;;  %1430 = vmatprep.mubr.bf16.mxu1 %v2588_v5 }
 0x349   :  { %1360 = vmatpush1.bf16.msra.mxu0 %v2651_v18  ;;  %1401 = vmatpush1.bf16.msra.mxu1 %v2698_v30 }
 0x34a   :  { %1361 = vmatprep.subr.bf16.mxu0 %v2654_v19  ;;  %1402 = vmatprep.subr.bf16.mxu1 %v2700_v31 }
 0x34d   :  { %1362 = vmatpush1.bf16.msra.mxu0 %v2662_v20  ;;  %1403 = vmatpush1.bf16.msra.mxu1 %v2711_v34  ;;  %v1164_v34 = vld [vmem:[#allocation2 + $0x3] ss:$8 sm:$0xf] }
 0x34e   :  { %1363 = vmatprep.subr.bf16.mxu0 %v2665_v21  ;;  %1404 = vmatprep.subr.bf16.mxu1 %v2714_v35  ;;  %v1166_v35 = vld [vmem:[#allocation2 + $0x23] ss:$8 sm:$0xf] }
 0x351   :  { %1364 = vmatpush1.bf16.msra.mxu0 %v2677_v24  ;;  %1405 = vmatpush1.bf16.msra.mxu1 %v2723_v38 }
 0x352   :  { %1365 = vmatprep.subr.bf16.mxu0 %v2680_v25  ;;  %1406 = vmatprep.subr.bf16.mxu1 %v2726_v39 }
 0x355   :  { %1366 = vmatpush1.bf16.msra.mxu0 %v2691_v28  ;;  %1407 = vmatpush1.bf16.msra.mxu1 %v2733_v41 }
 0x356   :  { %1367 = vmatprep.subr.bf16.mxu0 %v2694_v29  ;;  %1408 = vmatprep.subr.bf16.mxu1 %v2736_v42 }
 0x359   :  { %1368 = vmatpush1.bf16.msra.mxu0 %v2705_v32  ;;  %1409 = vmatpush1.bf16.msra.mxu1 %v2741_v43 }
 0x35a   :  { %1369 = vmatprep.subr.bf16.mxu0 %v2708_v33  ;;  %1410 = vmatprep.subr.bf16.mxu1 %v2745_v44 }
 0x35d   :  { %1370 = vmatpush1.bf16.msra.mxu0 %v2717_v36  ;;  %1411 = vmatpush1.bf16.msra.mxu1 %v2751_v45 }
 0x35e   :  { %1371 = vmatprep.subr.bf16.mxu0 %v2720_v37  ;;  %1412 = vmatprep.subr.bf16.mxu1 %v2754_v46 }
 0x361   :  { %1372 = vmatpush1.bf16.msra.mxu0 %v2729_v40  ;;  %1413 = vmatpush1.bf16.msra.mxu1 %v2759_v47 }
 0x362   :  { %1537 = vmatprep.subr.bf16.mxu0 %v2944_v12  ;;  %1578 = vmatprep.subr.bf16.mxu1 %v2673_v23 }
 0x404   :  { %v1211_v15 = vpop.f32.mrf.mxu0  ;;  %v1252_v18 = vpop.f32.mrf.mxu1 }
 0x406   :  { %v1213_v19 = vpop.f32.mrf.mxu0  ;;  %v1254_v20 = vpop.f32.mrf.mxu1 }
 0x407   :  { %v1263_v21 = vcombine.low %v1211_v15, %v1213_v19  ;;  %v1264_v24 = vcombine.low %v1252_v18, %v1254_v20 }
 0x408   :  { %v1215_v25 = vpop.f32.mrf.mxu0  ;;  %v1256_v26 = vpop.f32.mrf.mxu1 }
 0x409   :  { %v1271_v27 = vrot.slane %v1263_v21, %v2805_v52  ;;  %v1278_v28 = vrot.slane %v1264_v24, %v2805_v52  ;;  %v2961_v21 = vld [vmem:[#allocation3 + $0xe0] ss:$16 sps:$4 sm:$0xff]   ;;  %v2964_v24 = vld [vmem:[#allocation3 + $0xe8] ss:$16 sps:$4 sm:$0xff]   ;;  %v2967_v25 = vld [vmem:[#allocation3 + $0xc4] ss:$16 sps:$4 sm:$0xff]  }
 0x40a   :  { %v1216_v29 = vpop.f32.mrf.mxu0  ;;  %v1257_v30 = vpop.f32.mrf.mxu1  ;;  %v2970_v26 = vld [vmem:[#allocation3 + $0xcc] ss:$16 sps:$4 sm:$0xff]  }
 0x40b   :  { %v1279_v31 = vcombine.low %v1271_v27, %v1278_v28  ;;  %v1280_v32 = vcombine.high %v1271_v27, %v1278_v28  ;;  %v2975_v27 = vld [vmem:[#allocation3 + $0xc0] ss:$16 sps:$4 sm:$0xff]   ;;  %v2978_v28 = vld [vmem:[#allocation3 + $0xc8] ss:$16 sps:$4 sm:$0xff]   ;;  %v2981_v29 = vld [vmem:[#allocation3 + $0xa4] ss:$16 sps:$4 sm:$0xff]  }
 0x40c   :  { %v2984_v30 = vld [vmem:[#allocation3 + $0xac] ss:$16 sps:$4 sm:$0xff]  }
 0x40d   :  { %v1287_v33 = vrot.slane %v1279_v31, %v2805_v52  ;;  %v1294_v23 = vrot.slane %v1280_v32, %v2805_v52  ;;  %v2987_v31 = vld [vmem:[#allocation3 + $0xa0] ss:$16 sps:$4 sm:$0xff]   ;;  %v2990_v32 = vld [vmem:[#allocation3 + $0xa8] ss:$16 sps:$4 sm:$0xff]  }
 0x40f   :  { %v1297_v36 = vadd.f32 %v1287_v33, %v1164_v34  ;;  %v1298_v37 = vadd.f32 %v1294_v23, %v1166_v35  ;;  %v2993_v33 = vld [vmem:[#allocation3 + $0x84] ss:$16 sps:$4 sm:$0xff]   ;;  %v2996_v23 = vld [vmem:[#allocation3 + $0x8c] ss:$16 sps:$4 sm:$0xff]   ;;  %v2999_v34 = vld [vmem:[#allocation3 + $0x80] ss:$16 sps:$4 sm:$0xff]  }
 0x410   :  { %v3002_v35 = vld [vmem:[#allocation3 + $0x88] ss:$16 sps:$4 sm:$0xff]  }
 0x411   :  { %2407 = vtanh.f32 %v1297_v36  ;;  %v1307_v38 = vrot.slane %v1297_v36, 1  ;;  %v1308_v39 = vrot.slane %v1298_v37, 1  ;;  %v1317_v40 = vrot.slane %v1297_v36, 2 }
 0x412   :  { %2409 = vtanh.f32 %v1298_v37  ;;  %v1318_v41 = vrot.slane %v1298_v37, 2  ;;  %v1323_v42 = vrot.slane %v1297_v36, 3  ;;  %v1324_v44 = vrot.slane %v1298_v37, 3  ;;  %v3005_v36 = vld [vmem:[#allocation3 + $0x64] ss:$16 sps:$4 sm:$0xff]  }
 0x413   :  { %2411 = vtanh.f32 %v1307_v38  ;;  %v3008_v37 = vld [vmem:[#allocation3 + $0x6c] ss:$16 sps:$4 sm:$0xff]   ;;  %v3011_v38 = vld [vmem:[#allocation3 + $0x60] ss:$16 sps:$4 sm:$0xff]  }
 0x414   :  { %2413 = vtanh.f32 %v1308_v39  ;;  %v3014_v39 = vld [vmem:[#allocation3 + $0x68] ss:$16 sps:$4 sm:$0xff]  }
 0x415   :  { %2415 = vtanh.f32 %v1317_v40  ;;  %v3017_v40 = vld [vmem:[#allocation3 + $0x44] ss:$16 sps:$4 sm:$0xff]  }
 0x416   :  { %2417 = vtanh.f32 %v1318_v41  ;;  %v3020_v41 = vld [vmem:[#allocation3 + $0x4c] ss:$16 sps:$4 sm:$0xff]  }
 0x417   :  { %2419 = vtanh.f32 %v1323_v42  ;;  %v3023_v42 = vld [vmem:[#allocation3 + $0x40] ss:$16 sps:$4 sm:$0xff]  }
 0x418   :  { %2421 = vtanh.f32 %v1324_v44  ;;  %v3029_v44 = vld [vmem:[#allocation3 + $0x24] ss:$16 sps:$4 sm:$0xff]  }
 0x41e   :  { %v2408_v43 = vpop.eup %2407 }
 0x41f   :  { %v2410_v45 = vpop.eup %2409  ;;  %v1301_v46 = vmul.f32 0.5, %v2408_v43  ;;  %v3026_v43 = vld [vmem:[#allocation3 + $0x48] ss:$16 sps:$4 sm:$0xff]  }
 0x420   :  { %v2412_v4 = vpop.eup %2411  ;;  %v1302_v13 = vmul.f32 0.5, %v2410_v45  ;;  %v3032_v45 = vld [vmem:[#allocation3 + $0x2c] ss:$16 sps:$4 sm:$0xff]  }
 0x421   :  { %v2414_v14 = vpop.eup %2413  ;;  %v1303_v16 = vadd.f32 0.5, %v1301_v46  ;;  %v1313_v17 = vmul.f32 0.5, %v2412_v4  ;;  %v3035_v46 = vld [vmem:[#allocation3 + $0x20] ss:$16 sps:$4 sm:$0xff]   ;;  %v3038_v4 = vld [vmem:[#allocation3 + $0x28] ss:$16 sps:$4 sm:$0xff]  }
 0x422   :  { %v1304_v48 = vadd.f32 0.5, %v1302_v13  ;;  %v1314_v51 = vmul.f32 0.5, %v2414_v14  ;;  %v2416_v55 = vpop.eup %2415  ;;  %v3041_v13 = vld [vmem:[#allocation3 + $0x4] ss:$16 sps:$4 sm:$0xff]   ;;  %v3044_v14 = vld [vmem:[#allocation3 + $0xc] ss:$16 sps:$4 sm:$0xff]  }
 0x423   :  { %v1315_v53 = vadd.f32 0.5, %v1313_v17  ;;  %v2418_v50 = vpop.eup %2417  ;;  %v1335_v58 = vmul.f32 %v2416_v55, %v1303_v16  ;;  %v3047_v16 = vld [vmem:[#allocation3] ss:$16 sps:$4 sm:$0xff]   ;;  %v3052_v17 = vld [vmem:[#allocation3 + $0xec] ss:$16 sps:$4 sm:$0xff]  }
 0x424   :  { %v1316_v11 = vadd.f32 0.5, %v1314_v51  ;;  %v1336_v8 = vmul.f32 %v2418_v50, %v1304_v48  ;;  %v2420_v61 = vpop.eup %2419 }
 0x425   :  { %v1333_v7 = vmul.f32 %v1315_v53, %v2905_v56  ;;  %v2422_v22 = vpop.eup %2421  ;;  %v1329_v62 = vmul.f32 0.5, %v2420_v61 }
 0x426   :  { %v1334_v60 = vmul.f32 %v1316_v11, %v2907_v57  ;;  %v1330_v63 = vmul.f32 0.5, %v2422_v22 }
 0x427   :  { %v2954_v54 = vadd.f32 %v1335_v58, %v1333_v7  ;;  %v1331_v49 = vadd.f32 0.5, %v1329_v62 }
 0x428   :  { %v2956_v59 = vadd.f32 %v1336_v8, %v1334_v60  ;;  %v1332_v1 = vadd.f32 0.5, %v1330_v63 }
 0x429   :  { %2423 = vtanh.f32 %v2954_v54 }
 0x42a   :  { %2425 = vtanh.f32 %v2956_v59 }
 0x436   :  { %v2424_v0 = vpop.eup %2423 }
 0x437   :  { %v2426_v56 = vpop.eup %2425  ;;  %v1341_v2 = vmul.f32 %v2424_v0, %v1331_v49  ;;  %v1344_v0 = vld [vmem:[#allocation2 + $0x4] ss:$8 sm:$0xf] }
 0x438   :  { %v1342_v6 = vmul.f32 %v2426_v56, %v1332_v1  ;;  %v1346_v1 = vld [vmem:[#allocation2 + $0x24] ss:$8 sm:$0xf] }
 0x439   :  { %v1347_v57 = vpack.c.bf16 %v1341_v2, %v1341_v2 }
 0x43a   :  { %v1348_v9 = vpack.c.bf16 %v1342_v6, %v1342_v6 }
 0x43b   :  { %v1351_v15 = vunpack.c.l.b16 %v1347_v57 }
 0x43c   :  { %v1352_v10 = vunpack.c.l.b16 %v1348_v9 }
 0x43e   :  { %v1353_v18 = vrot.slane %v1352_v10, 7 }
 0x440   :  { %v1354_v19 = vsel %vm813_vm2, %v1353_v18, %v1351_v15 }
 0x441   :  { %v1355_v20 = vpack.c.b16 %v1354_v19, %v1354_v19 }
 0x443   :  { %1390 = vmatmul.mubr.bf16.vlgmr.msra.gmra.mxu0 %v1355_v20  ;;  %1431 = vmatmul.mubr.bf16.vlgmr.msra.gmra.mxu1 %v1355_v20 }
 0x444   :  { %1538 = vmatpush1.bf16.msra.mxu0 %v2961_v21  ;;  %1579 = vmatpush1.bf16.msra.mxu1 %v2964_v24 }
 0x445   :  { %1539 = vmatprep.subr.bf16.mxu0 %v2967_v25  ;;  %1580 = vmatprep.subr.bf16.mxu1 %v2970_v26 }
 0x446   :  { %1569 = vmatprep.mubr.bf16.mxu0 %v2588_v5  ;;  %1610 = vmatprep.mubr.bf16.mxu1 %v2588_v5 }
 0x448   :  { %1540 = vmatpush1.bf16.msra.mxu0 %v2975_v27  ;;  %1581 = vmatpush1.bf16.msra.mxu1 %v2978_v28 }
 0x449   :  { %1541 = vmatprep.subr.bf16.mxu0 %v2981_v29  ;;  %1582 = vmatprep.subr.bf16.mxu1 %v2984_v30 }
 0x44c   :  { %1542 = vmatpush1.bf16.msra.mxu0 %v2987_v31  ;;  %1583 = vmatpush1.bf16.msra.mxu1 %v2990_v32 }
 0x44d   :  { %1543 = vmatprep.subr.bf16.mxu0 %v2993_v33  ;;  %1584 = vmatprep.subr.bf16.mxu1 %v2996_v23 }
 0x450   :  { %1544 = vmatpush1.bf16.msra.mxu0 %v2999_v34  ;;  %1585 = vmatpush1.bf16.msra.mxu1 %v3002_v35 }
 0x451   :  { %1545 = vmatprep.subr.bf16.mxu0 %v3005_v36  ;;  %1586 = vmatprep.subr.bf16.mxu1 %v3008_v37 }
 0x454   :  { %1546 = vmatpush1.bf16.msra.mxu0 %v3011_v38  ;;  %1587 = vmatpush1.bf16.msra.mxu1 %v3014_v39 }
 0x455   :  { %1547 = vmatprep.subr.bf16.mxu0 %v3017_v40  ;;  %1588 = vmatprep.subr.bf16.mxu1 %v3020_v41 }
 0x458   :  { %1548 = vmatpush1.bf16.msra.mxu0 %v3023_v42  ;;  %1589 = vmatpush1.bf16.msra.mxu1 %v3026_v43 }
 0x459   :  { %1549 = vmatprep.subr.bf16.mxu0 %v3029_v44  ;;  %1590 = vmatprep.subr.bf16.mxu1 %v3032_v45 }
 0x45c   :  { %1550 = vmatpush1.bf16.msra.mxu0 %v3035_v46  ;;  %1591 = vmatpush1.bf16.msra.mxu1 %v3038_v4 }
 0x45d   :  { %1551 = vmatprep.subr.bf16.mxu0 %v3041_v13  ;;  %1592 = vmatprep.subr.bf16.mxu1 %v3044_v14 }
 0x460   :  { %1552 = vmatpush1.bf16.msra.mxu0 %v3047_v16  ;;  %1593 = vmatpush1.bf16.msra.mxu1 %v2759_v47 }
 0x461   :  { %1717 = vmatprep.subr.bf16.mxu0 %v2944_v12  ;;  %1758 = vmatprep.subr.bf16.mxu1 %v3052_v17 }
 0x503   :  { %v1391_v48 = vpop.f32.mrf.mxu0  ;;  %v1432_v51 = vpop.f32.mrf.mxu1 }
 0x505   :  { %v1393_v53 = vpop.f32.mrf.mxu0  ;;  %v1434_v55 = vpop.f32.mrf.mxu1 }
 0x506   :  { %v1443_v11 = vcombine.low %v1391_v48, %v1393_v53  ;;  %v1444_v50 = vcombine.low %v1432_v51, %v1434_v55 }
 0x507   :  { %v1395_v7 = vpop.f32.mrf.mxu0  ;;  %v1436_v58 = vpop.f32.mrf.mxu1 }
 0x508   :  { %v1451_v60 = vrot.slane %v1443_v11, %v2805_v52  ;;  %v1458_v8 = vrot.slane %v1444_v50, %v2805_v52 }
 0x509   :  { %v1396_v61 = vpop.f32.mrf.mxu0  ;;  %v1437_v47 = vpop.f32.mrf.mxu1 }
 0x50a   :  { %v1459_v22 = vcombine.low %v1451_v60, %v1458_v8  ;;  %v1460_v62 = vcombine.high %v1451_v60, %v1458_v8 }
 0x50c   :  { %v1467_v63 = vrot.slane %v1459_v22, %v2805_v52  ;;  %v1474_v49 = vrot.slane %v1460_v62, %v2805_v52 }
 0x50e   :  { %v1477_v56 = vadd.f32 %v1467_v63, %v1344_v0  ;;  %v1478_v2 = vadd.f32 %v1474_v49, %v1346_v1 }
 0x510   :  { %2427 = vtanh.f32 %v1477_v56  ;;  %v1487_v6 = vrot.slane %v1477_v56, 1  ;;  %v1488_v57 = vrot.slane %v1478_v2, 1  ;;  %v1497_v9 = vrot.slane %v1477_v56, 2 }
 0x511   :  { %2429 = vtanh.f32 %v1478_v2  ;;  %v1498_v10 = vrot.slane %v1478_v2, 2  ;;  %v1503_v15 = vrot.slane %v1477_v56, 3  ;;  %v1504_v19 = vrot.slane %v1478_v2, 3 }
 0x512   :  { %2431 = vtanh.f32 %v1487_v6 }
 0x513   :  { %2433 = vtanh.f32 %v1488_v57 }
 0x514   :  { %2435 = vtanh.f32 %v1497_v9 }
 0x515   :  { %2437 = vtanh.f32 %v1498_v10 }
 0x516   :  { %2439 = vtanh.f32 %v1503_v15 }
 0x517   :  { %2441 = vtanh.f32 %v1504_v19 }
 0x51d   :  { %v2428_v18 = vpop.eup %2427 }
 0x51e   :  { %v2430_v20 = vpop.eup %2429  ;;  %v1481_v48 = vmul.f32 0.5, %v2428_v18 }
 0x51f   :  { %v2432_v51 = vpop.eup %2431  ;;  %v1482_v53 = vmul.f32 0.5, %v2430_v20 }
 0x520   :  { %v2434_v55 = vpop.eup %2433  ;;  %v1483_v11 = vadd.f32 0.5, %v1481_v48  ;;  %v1493_v50 = vmul.f32 0.5, %v2432_v51 }
 0x521   :  { %v1484_v7 = vadd.f32 0.5, %v1482_v53  ;;  %v1494_v58 = vmul.f32 0.5, %v2434_v55  ;;  %v2436_v8 = vpop.eup %2435 }
 0x522   :  { %v1495_v60 = vadd.f32 0.5, %v1493_v50  ;;  %v2438_v47 = vpop.eup %2437  ;;  %v1515_v62 = vmul.f32 %v2436_v8, %v1483_v11  ;;  %v3099_v50 = vld [vmem:[#allocation3 + $0x8] ss:$16 sps:$4 sm:$0xff]  }
 0x523   :  { %v1496_v61 = vadd.f32 0.5, %v1494_v58  ;;  %v1516_v49 = vmul.f32 %v2438_v47, %v1484_v7  ;;  %v2440_v56 = vpop.eup %2439 }
 0x524   :  { %v1513_v22 = vmul.f32 %v1495_v60, %v2954_v54  ;;  %v2442_v2 = vpop.eup %2441  ;;  %v1509_v6 = vmul.f32 0.5, %v2440_v56 }
 0x525   :  { %v1514_v63 = vmul.f32 %v1496_v61, %v2956_v59  ;;  %v1510_v57 = vmul.f32 0.5, %v2442_v2 }
 0x526   :  { %v3061_v0 = vadd.f32 %v1515_v62, %v1513_v22  ;;  %v1511_v9 = vadd.f32 0.5, %v1509_v6 }
 0x527   :  { %v3063_v1 = vadd.f32 %v1516_v49, %v1514_v63  ;;  %v1512_v15 = vadd.f32 0.5, %v1510_v57 }
 0x528   :  { %2443 = vtanh.f32 %v3061_v0 }
 0x529   :  { %2445 = vtanh.f32 %v3063_v1 }
 0x535   :  { %v2444_v10 = vpop.eup %2443 }
 0x536   :  { %v2446_v54 = vpop.eup %2445  ;;  %v1521_v18 = vmul.f32 %v2444_v10, %v1511_v9  ;;  %v1524_v9 = vld [vmem:[#allocation2 + $0x5] ss:$8 sm:$0xf] }
 0x537   :  { %v1522_v19 = vmul.f32 %v2446_v54, %v1512_v15  ;;  %v1526_v10 = vld [vmem:[#allocation2 + $0x25] ss:$8 sm:$0xf] }
 0x538   :  { %v1527_v59 = vpack.c.bf16 %v1521_v18, %v1521_v18 }
 0x539   :  { %v1528_v20 = vpack.c.bf16 %v1522_v19, %v1522_v19 }
 0x53a   :  { %v1531_v51 = vunpack.c.l.b16 %v1527_v59 }
 0x53b   :  { %v1532_v48 = vunpack.c.l.b16 %v1528_v20 }
 0x53d   :  { %v1533_v53 = vrot.slane %v1532_v48, 7 }
 0x53f   :  { %v1534_v55 = vsel %vm813_vm2, %v1533_v53, %v1531_v51 }
 0x540   :  { %v1535_v11 = vpack.c.b16 %v1534_v55, %v1534_v55 }
 0x542   :  { %1570 = vmatmul.mubr.bf16.vlgmr.msra.gmra.mxu0 %v1535_v11  ;;  %1611 = vmatmul.mubr.bf16.vlgmr.msra.gmra.mxu1 %v1535_v11 }
 0x543   :  { %1718 = vmatpush1.bf16.msra.mxu0 %v2961_v21  ;;  %1759 = vmatpush1.bf16.msra.mxu1 %v2964_v24 }
 0x544   :  { %1719 = vmatprep.subr.bf16.mxu0 %v2967_v25  ;;  %1760 = vmatprep.subr.bf16.mxu1 %v2970_v26 }
 0x545   :  { %1749 = vmatprep.mubr.bf16.mxu0 %v2588_v5  ;;  %1790 = vmatprep.mubr.bf16.mxu1 %v2588_v5 }
 0x547   :  { %1720 = vmatpush1.bf16.msra.mxu0 %v2975_v27  ;;  %1761 = vmatpush1.bf16.msra.mxu1 %v2978_v28 }
 0x548   :  { %1721 = vmatprep.subr.bf16.mxu0 %v2981_v29  ;;  %1762 = vmatprep.subr.bf16.mxu1 %v2984_v30 }
 0x54b   :  { %1722 = vmatpush1.bf16.msra.mxu0 %v2987_v31  ;;  %1763 = vmatpush1.bf16.msra.mxu1 %v2990_v32 }
 0x54c   :  { %1723 = vmatprep.subr.bf16.mxu0 %v2993_v33  ;;  %1764 = vmatprep.subr.bf16.mxu1 %v2996_v23 }
 0x54f   :  { %1724 = vmatpush1.bf16.msra.mxu0 %v2999_v34  ;;  %1765 = vmatpush1.bf16.msra.mxu1 %v3002_v35 }
 0x550   :  { %1725 = vmatprep.subr.bf16.mxu0 %v3005_v36  ;;  %1766 = vmatprep.subr.bf16.mxu1 %v3008_v37 }
 0x553   :  { %1726 = vmatpush1.bf16.msra.mxu0 %v3011_v38  ;;  %1767 = vmatpush1.bf16.msra.mxu1 %v3014_v39 }
 0x554   :  { %1727 = vmatprep.subr.bf16.mxu0 %v3017_v40  ;;  %1768 = vmatprep.subr.bf16.mxu1 %v3020_v41 }
 0x557   :  { %1728 = vmatpush1.bf16.msra.mxu0 %v3023_v42  ;;  %1769 = vmatpush1.bf16.msra.mxu1 %v3026_v43 }
 0x558   :  { %1729 = vmatprep.subr.bf16.mxu0 %v3029_v44  ;;  %1770 = vmatprep.subr.bf16.mxu1 %v3032_v45 }
 0x55b   :  { %1730 = vmatpush1.bf16.msra.mxu0 %v3035_v46  ;;  %1771 = vmatpush1.bf16.msra.mxu1 %v3038_v4 }
 0x55c   :  { %1731 = vmatprep.subr.bf16.mxu0 %v3041_v13  ;;  %1772 = vmatprep.subr.bf16.mxu1 %v3044_v14 }
 0x55f   :  { %1732 = vmatpush1.bf16.msra.mxu0 %v3047_v16  ;;  %1773 = vmatpush1.bf16.msra.mxu1 %v3099_v50 }
 0x560   :  { %1897 = vmatprep.subr.bf16.mxu0 %v2944_v12  ;;  %1938 = vmatprep.subr.bf16.mxu1 %v3052_v17 }
 0x602   :  { %v1571_v7 = vpop.f32.mrf.mxu0  ;;  %v1612_v58 = vpop.f32.mrf.mxu1 }
 0x604   :  { %v1573_v60 = vpop.f32.mrf.mxu0  ;;  %v1614_v8 = vpop.f32.mrf.mxu1 }
 0x605   :  { %v1623_v61 = vcombine.low %v1571_v7, %v1573_v60  ;;  %v1624_v47 = vcombine.low %v1612_v58, %v1614_v8 }
 0x606   :  { %v1575_v22 = vpop.f32.mrf.mxu0  ;;  %v1616_v62 = vpop.f32.mrf.mxu1 }
 0x607   :  { %v1631_v63 = vrot.slane %v1623_v61, %v2805_v52  ;;  %v1638_v49 = vrot.slane %v1624_v47, %v2805_v52 }
 0x608   :  { %v1576_v56 = vpop.f32.mrf.mxu0  ;;  %v1617_v2 = vpop.f32.mrf.mxu1 }
 0x609   :  { %v1639_v6 = vcombine.low %v1631_v63, %v1638_v49  ;;  %v1640_v57 = vcombine.high %v1631_v63, %v1638_v49 }
 0x60b   :  { %v1647_v12 = vrot.slane %v1639_v6, %v2805_v52  ;;  %v1654_v17 = vrot.slane %v1640_v57, %v2805_v52 }
 0x60d   :  { %v1657_v15 = vadd.f32 %v1647_v12, %v1524_v9  ;;  %v1658_v54 = vadd.f32 %v1654_v17, %v1526_v10 }
 0x60f   :  { %2447 = vtanh.f32 %v1657_v15  ;;  %v1667_v18 = vrot.slane %v1657_v15, 1  ;;  %v1668_v19 = vrot.slane %v1658_v54, 1  ;;  %v1677_v59 = vrot.slane %v1657_v15, 2 }
 0x610   :  { %2449 = vtanh.f32 %v1658_v54  ;;  %v1678_v20 = vrot.slane %v1658_v54, 2  ;;  %v1683_v48 = vrot.slane %v1657_v15, 3  ;;  %v1684_v53 = vrot.slane %v1658_v54, 3 }
 0x611   :  { %2451 = vtanh.f32 %v1667_v18 }
 0x612   :  { %2453 = vtanh.f32 %v1668_v19 }
 0x613   :  { %2455 = vtanh.f32 %v1677_v59 }
 0x614   :  { %2457 = vtanh.f32 %v1678_v20 }
 0x615   :  { %2459 = vtanh.f32 %v1683_v48 }
 0x616   :  { %2461 = vtanh.f32 %v1684_v53 }
 0x61c   :  { %v2448_v51 = vpop.eup %2447 }
 0x61d   :  { %v2450_v55 = vpop.eup %2449  ;;  %v1661_v11 = vmul.f32 0.5, %v2448_v51 }
 0x61e   :  { %v2452_v7 = vpop.eup %2451  ;;  %v1662_v58 = vmul.f32 0.5, %v2450_v55 }
 0x61f   :  { %v2454_v60 = vpop.eup %2453  ;;  %v1663_v8 = vadd.f32 0.5, %v1661_v11  ;;  %v1673_v61 = vmul.f32 0.5, %v2452_v7 }
 0x620   :  { %v1664_v47 = vadd.f32 0.5, %v1662_v58  ;;  %v1674_v22 = vmul.f32 0.5, %v2454_v60  ;;  %v2456_v63 = vpop.eup %2455 }
 0x621   :  { %v1675_v62 = vadd.f32 0.5, %v1673_v61  ;;  %v2458_v56 = vpop.eup %2457  ;;  %v1695_v6 = vmul.f32 %v2456_v63, %v1663_v8 }
 0x622   :  { %v1676_v49 = vadd.f32 0.5, %v1674_v22  ;;  %v1696_v12 = vmul.f32 %v2458_v56, %v1664_v47  ;;  %v2460_v10 = vpop.eup %2459 }
 0x623   :  { %v1693_v2 = vmul.f32 %v1675_v62, %v3061_v0  ;;  %v2462_v15 = vpop.eup %2461  ;;  %v1689_v54 = vmul.f32 0.5, %v2460_v10 }
 0x624   :  { %v1694_v57 = vmul.f32 %v1676_v49, %v3063_v1  ;;  %v1690_v18 = vmul.f32 0.5, %v2462_v15 }
 0x625   :  { %v3110_v17 = vadd.f32 %v1695_v6, %v1693_v2  ;;  %v1691_v19 = vadd.f32 0.5, %v1689_v54 }
 0x626   :  { %v3112_v9 = vadd.f32 %v1696_v12, %v1694_v57  ;;  %v1692_v20 = vadd.f32 0.5, %v1690_v18 }
 0x627   :  { %2463 = vtanh.f32 %v3110_v17 }
 0x628   :  { %2465 = vtanh.f32 %v3112_v9 }
 0x634   :  { %v2464_v59 = vpop.eup %2463 }
 0x635   :  { %v2466_v0 = vpop.eup %2465  ;;  %v1701_v48 = vmul.f32 %v2464_v59, %v1691_v19 }
 0x636   :  { %v1702_v51 = vmul.f32 %v2466_v0, %v1692_v20 }
 0x637   :  { %v1707_v1 = vpack.c.bf16 %v1701_v48, %v1701_v48 }
 0x638   :  { %v1708_v53 = vpack.c.bf16 %v1702_v51, %v1702_v51 }
 0x639   :  { %v1711_v11 = vunpack.c.l.b16 %v1707_v1 }
 0x63a   :  { %v1712_v55 = vunpack.c.l.b16 %v1708_v53 }
 0x63c   :  { %v1713_v7 = vrot.slane %v1712_v55, 7 }
 0x63e   :  { %v1714_v58 = vsel %vm813_vm2, %v1713_v7, %v1711_v11 }
 0x63f   :  { %v1715_v60 = vpack.c.b16 %v1714_v58, %v1714_v58 }
 0x641   :  { %1750 = vmatmul.mubr.bf16.vlgmr.msra.gmra.mxu0 %v1715_v60  ;;  %1791 = vmatmul.mubr.bf16.vlgmr.msra.gmra.mxu1 %v1715_v60 }
 0x642   :  { %1898 = vmatpush1.bf16.msra.mxu0 %v2961_v21  ;;  %1939 = vmatpush1.bf16.msra.mxu1 %v2964_v24 }
 0x643   :  { %1899 = vmatprep.subr.bf16.mxu0 %v2967_v25  ;;  %1940 = vmatprep.subr.bf16.mxu1 %v2970_v26 }
 0x644   :  { %1929 = vmatprep.mubr.bf16.mxu0 %v2588_v5  ;;  %1970 = vmatprep.mubr.bf16.mxu1 %v2588_v5 }
 0x646   :  { %1900 = vmatpush1.bf16.msra.mxu0 %v2975_v27  ;;  %1941 = vmatpush1.bf16.msra.mxu1 %v2978_v28 }
 0x647   :  { %1901 = vmatprep.subr.bf16.mxu0 %v2981_v29  ;;  %1942 = vmatprep.subr.bf16.mxu1 %v2984_v30 }
 0x64a   :  { %1902 = vmatpush1.bf16.msra.mxu0 %v2987_v31  ;;  %1943 = vmatpush1.bf16.msra.mxu1 %v2990_v32 }
 0x64b   :  { %1903 = vmatprep.subr.bf16.mxu0 %v2993_v33  ;;  %1944 = vmatprep.subr.bf16.mxu1 %v2996_v23 }
 0x64e   :  { %1904 = vmatpush1.bf16.msra.mxu0 %v2999_v34  ;;  %1945 = vmatpush1.bf16.msra.mxu1 %v3002_v35 }
 0x64f   :  { %1905 = vmatprep.subr.bf16.mxu0 %v3005_v36  ;;  %1946 = vmatprep.subr.bf16.mxu1 %v3008_v37  ;;  %v1704_v37 = vld [vmem:[#allocation2 + $0x6] ss:$8 sm:$0xf] }
 0x652   :  { %1906 = vmatpush1.bf16.msra.mxu0 %v3011_v38  ;;  %1947 = vmatpush1.bf16.msra.mxu1 %v3014_v39  ;;  %v1706_v38 = vld [vmem:[#allocation2 + $0x26] ss:$8 sm:$0xf] }
 0x653   :  { %1907 = vmatprep.subr.bf16.mxu0 %v3017_v40  ;;  %1948 = vmatprep.subr.bf16.mxu1 %v3020_v41 }
 0x656   :  { %1908 = vmatpush1.bf16.msra.mxu0 %v3023_v42  ;;  %1949 = vmatpush1.bf16.msra.mxu1 %v3026_v43 }
 0x657   :  { %1909 = vmatprep.subr.bf16.mxu0 %v3029_v44  ;;  %1950 = vmatprep.subr.bf16.mxu1 %v3032_v45 }
 0x65a   :  { %1910 = vmatpush1.bf16.msra.mxu0 %v3035_v46  ;;  %1951 = vmatpush1.bf16.msra.mxu1 %v3038_v4 }
 0x65b   :  { %1911 = vmatprep.subr.bf16.mxu0 %v3041_v13  ;;  %1952 = vmatprep.subr.bf16.mxu1 %v3044_v14 }
 0x65e   :  { %1912 = vmatpush1.bf16.msra.mxu0 %v3047_v16  ;;  %1953 = vmatpush1.bf16.msra.mxu1 %v3099_v50 }
 0x65f   :  { %2254 = vmatprep.subr.mxu0 %v2587_v3 }
 0x701   :  { %v1751_v5 = vpop.f32.mrf.mxu0  ;;  %v1792_v21 = vpop.f32.mrf.mxu1 }
 0x703   :  { %v1753_v24 = vpop.f32.mrf.mxu0  ;;  %v1794_v25 = vpop.f32.mrf.mxu1 }
 0x704   :  { %v1803_v26 = vcombine.low %v1751_v5, %v1753_v24  ;;  %v1804_v27 = vcombine.low %v1792_v21, %v1794_v25  ;;  %v2078_v21 = vld [vmem:[%s3245_s4 + $0x78] sm:$0xff]  ;;  %v2077_v24 = vld [vmem:[%s3245_s4 + $0x70] sm:$0xff]  ;;  %v2076_v25 = vld [vmem:[%s3245_s4 + $0x68] sm:$0xff] }
 0x705   :  { %v1755_v28 = vpop.f32.mrf.mxu0  ;;  %v1796_v29 = vpop.f32.mrf.mxu1 }
 0x706   :  { %v1811_v30 = vrot.slane %v1803_v26, %v2805_v52  ;;  %v1818_v31 = vrot.slane %v1804_v27, %v2805_v52  ;;  %v2075_v26 = vld [vmem:[%s3245_s4 + $0x60] sm:$0xff]  ;;  %v2074_v27 = vld [vmem:[%s3245_s4 + $0x58] sm:$0xff]  ;;  %v2073_v28 = vld [vmem:[%s3245_s4 + $0x50] sm:$0xff] }
 0x707   :  { %v1756_v32 = vpop.f32.mrf.mxu0  ;;  %v1797_v33 = vpop.f32.mrf.mxu1  ;;  %v2072_v29 = vld [vmem:[%s3245_s4 + $0x48] sm:$0xff] }
 0x708   :  { %v1819_v23 = vcombine.low %v1811_v30, %v1818_v31  ;;  %v1820_v34 = vcombine.high %v1811_v30, %v1818_v31  ;;  %v2071_v30 = vld [vmem:[%s3245_s4 + $0x40] sm:$0xff]  ;;  %v2070_v31 = vld [vmem:[%s3245_s4 + $0x38] sm:$0xff]  ;;  %v2069_v32 = vld [vmem:[%s3245_s4 + $0x30] sm:$0xff] }
 0x709   :  { %v2068_v33 = vld [vmem:[%s3245_s4 + $0x28] sm:$0xff] }
 0x70a   :  { %v1827_v35 = vrot.slane %v1819_v23, %v2805_v52  ;;  %v1834_v36 = vrot.slane %v1820_v34, %v2805_v52  ;;  %v2067_v23 = vld [vmem:[%s3245_s4 + $0x20] sm:$0xff]  ;;  %v2066_v34 = vld [vmem:[%s3245_s4 + $0x18] sm:$0xff] }
 0x70c   :  { %v1837_v39 = vadd.f32 %v1827_v35, %v1704_v37  ;;  %v1838_v40 = vadd.f32 %v1834_v36, %v1706_v38  ;;  %v2065_v35 = vld [vmem:[%s3245_s4 + $0x10] sm:$0xff]  ;;  %v2064_v36 = vld [vmem:[%s3245_s4 + $0x8] sm:$0xff]  ;;  %v2063_v37 = vld [vmem:[%s3245_s4] sm:$0xff] }
 0x70e   :  { %2467 = vtanh.f32 %v1837_v39  ;;  %v1847_v41 = vrot.slane %v1837_v39, 1  ;;  %v1848_v42 = vrot.slane %v1838_v40, 1  ;;  %v1857_v43 = vrot.slane %v1837_v39, 2 }
 0x70f   :  { %2469 = vtanh.f32 %v1838_v40  ;;  %v1858_v44 = vrot.slane %v1838_v40, 2  ;;  %v1863_v45 = vrot.slane %v1837_v39, 3  ;;  %v1864_v4 = vrot.slane %v1838_v40, 3 }
 0x710   :  { %2471 = vtanh.f32 %v1847_v41 }
 0x711   :  { %2473 = vtanh.f32 %v1848_v42 }
 0x712   :  { %2475 = vtanh.f32 %v1857_v43 }
 0x713   :  { %2477 = vtanh.f32 %v1858_v44 }
 0x714   :  { %2479 = vtanh.f32 %v1863_v45 }
 0x715   :  { %2481 = vtanh.f32 %v1864_v4 }
 0x71b   :  { %v2468_v46 = vpop.eup %2467 }
 0x71c   :  { %v2470_v13 = vpop.eup %2469  ;;  %v1841_v14 = vmul.f32 0.5, %v2468_v46 }
 0x71d   :  { %v2472_v16 = vpop.eup %2471  ;;  %v1842_v50 = vmul.f32 0.5, %v2470_v13 }
 0x71e   :  { %v2474_v8 = vpop.eup %2473  ;;  %v1843_v61 = vadd.f32 0.5, %v1841_v14  ;;  %v1853_v47 = vmul.f32 0.5, %v2472_v16 }
 0x71f   :  { %v1844_v22 = vadd.f32 0.5, %v1842_v50  ;;  %v1854_v62 = vmul.f32 0.5, %v2474_v8  ;;  %v2476_v49 = vpop.eup %2475 }
 0x720   :  { %v1855_v63 = vadd.f32 0.5, %v1853_v47  ;;  %v2478_v2 = vpop.eup %2477  ;;  %v1875_v57 = vmul.f32 %v2476_v49, %v1843_v61  ;;  %v1884_v61 = vld [vmem:[#allocation2 + $0x7] ss:$8 sm:$0xf] }
 0x721   :  { %v1856_v56 = vadd.f32 0.5, %v1854_v62  ;;  %v1876_v10 = vmul.f32 %v2478_v2, %v1844_v22  ;;  %v2480_v18 = vpop.eup %2479  ;;  %v1886_v47 = vld [vmem:[#allocation2 + $0x27] ss:$8 sm:$0xf] }
 0x722   :  { %v1873_v6 = vmul.f32 %v1855_v63, %v3110_v17  ;;  %v2482_v19 = vpop.eup %2481  ;;  %v1869_v59 = vmul.f32 0.5, %v2480_v18 }
 0x723   :  { %v1874_v12 = vmul.f32 %v1856_v56, %v3112_v9  ;;  %v1870_v20 = vmul.f32 0.5, %v2482_v19 }
 0x724   :  { %v3156_v15 = vadd.f32 %v1875_v57, %v1873_v6  ;;  %v1871_v0 = vadd.f32 0.5, %v1869_v59 }
 0x725   :  { %v3158_v54 = vadd.f32 %v1876_v10, %v1874_v12  ;;  %v1872_v51 = vadd.f32 0.5, %v1870_v20 }
 0x726   :  { %2483 = vtanh.f32 %v3156_v15 }
 0x727   :  { %2485 = vtanh.f32 %v3158_v54 }
 0x733   :  { %v2484_v48 = vpop.eup %2483 }
 0x734   :  { %v2486_v17 = vpop.eup %2485  ;;  %v1881_v1 = vmul.f32 %v2484_v48, %v1871_v0 }
 0x735   :  { %v1882_v53 = vmul.f32 %v2486_v17, %v1872_v51 }
 0x736   :  { %v1887_v9 = vpack.c.bf16 %v1881_v1, %v1881_v1 }
 0x737   :  { %v1888_v55 = vpack.c.bf16 %v1882_v53, %v1882_v53 }
 0x738   :  { %v1891_v7 = vunpack.c.l.b16 %v1887_v9 }
 0x739   :  { %v1892_v11 = vunpack.c.l.b16 %v1888_v55 }
 0x73b   :  { %v1893_v58 = vrot.slane %v1892_v11, 7 }
 0x73d   :  { %v1894_v60 = vsel %vm813_vm2, %v1893_v58, %v1891_v7 }
 0x73e   :  { %v1895_v5 = vpack.c.b16 %v1894_v60, %v1894_v60 }
 0x740   :  { %1930 = vmatmul.mubr.bf16.vlgmr.msra.gmra.mxu0 %v1895_v5  ;;  %1971 = vmatmul.mubr.bf16.vlgmr.msra.gmra.mxu1 %v1895_v5 }
 0x741   :  { %2255 = vmatpush3.msra.mxu0 %v2078_v21  ;;  %2286 = vmatprep.mubr.msk.f32.mxu0 %vm2590_vm3, %v2587_v3 }
 0x742   :  { %2256 = vmatprep.subr.mxu0 %v2587_v3 }
 0x743   :  { %2257 = vmatpush3.msra.mxu0 %v2077_v24 }
 0x744   :  { %2258 = vmatprep.subr.mxu0 %v2587_v3 }
 0x745   :  { %2259 = vmatpush3.msra.mxu0 %v2076_v25 }
 0x746   :  { %2260 = vmatprep.subr.mxu0 %v2587_v3 }
 0x747   :  { %2261 = vmatpush3.msra.mxu0 %v2075_v26 }
 0x748   :  { %2262 = vmatprep.subr.mxu0 %v2587_v3 }
 0x749   :  { %2263 = vmatpush3.msra.mxu0 %v2074_v27 }
 0x74a   :  { %2264 = vmatprep.subr.mxu0 %v2587_v3 }
 0x74b   :  { %2265 = vmatpush3.msra.mxu0 %v2073_v28 }
 0x74c   :  { %2266 = vmatprep.subr.mxu0 %v2587_v3 }
 0x74d   :  { %2267 = vmatpush3.msra.mxu0 %v2072_v29 }
 0x74e   :  { %2268 = vmatprep.subr.mxu0 %v2587_v3 }
 0x74f   :  { %2269 = vmatpush3.msra.mxu0 %v2071_v30 }
 0x750   :  { %2270 = vmatprep.subr.mxu0 %v2587_v3 }
 0x751   :  { %2271 = vmatpush3.msra.mxu0 %v2070_v31 }
 0x752   :  { %2272 = vmatprep.subr.mxu0 %v2587_v3 }
 0x753   :  { %2273 = vmatpush3.msra.mxu0 %v2069_v32 }
 0x754   :  { %2274 = vmatprep.subr.mxu0 %v2587_v3 }
 0x755   :  { %2275 = vmatpush3.msra.mxu0 %v2068_v33 }
 0x756   :  { %2276 = vmatprep.subr.mxu0 %v2587_v3 }
 0x757   :  { %2277 = vmatpush3.msra.mxu0 %v2067_v23 }
 0x758   :  { %2278 = vmatprep.subr.mxu0 %v2587_v3 }
 0x759   :  { %2279 = vmatpush3.msra.mxu0 %v2066_v34  ;;  %v2236_v34 = vld [vmem:[%s3246_s5] ss:$0 sm:$0xff] }
 0x75a   :  { %2280 = vmatprep.subr.mxu0 %v2587_v3 }
 0x75b   :  { %2281 = vmatpush3.msra.mxu0 %v2065_v35 }
 0x75c   :  { %2282 = vmatprep.subr.mxu0 %v2587_v3 }
 0x75d   :  { %2283 = vmatpush3.msra.mxu0 %v2064_v36 }
 0x75e   :  { %2284 = vmatprep.subr.mxu0 %v2587_v3 }
 0x75f   :  { %2285 = vmatpush3.msra.mxu0 %v2063_v37 }
 0x800   :  { %v1931_v38 = vpop.f32.mrf.mxu0  ;;  %v1972_v39 = vpop.f32.mrf.mxu1 }
 0x802   :  { %v1933_v40 = vpop.f32.mrf.mxu0  ;;  %v1974_v41 = vpop.f32.mrf.mxu1 }
 0x803   :  { %v1983_v42 = vcombine.low %v1931_v38, %v1933_v40  ;;  %v1984_v43 = vcombine.low %v1972_v39, %v1974_v41 }
 0x804   :  { %v1935_v44 = vpop.f32.mrf.mxu0  ;;  %v1976_v45 = vpop.f32.mrf.mxu1 }
 0x805   :  { %v1991_v46 = vrot.slane %v1983_v42, %v2805_v52  ;;  %v1998_v4 = vrot.slane %v1984_v43, %v2805_v52 }
 0x806   :  { %v1936_v13 = vpop.f32.mrf.mxu0  ;;  %v1977_v14 = vpop.f32.mrf.mxu1 }
 0x807   :  { %v1999_v16 = vcombine.low %v1991_v46, %v1998_v4  ;;  %v2000_v50 = vcombine.high %v1991_v46, %v1998_v4 }
 0x809   :  { %v2007_v8 = vrot.slane %v1999_v16, %v2805_v52  ;;  %v2014_v3 = vrot.slane %v2000_v50, %v2805_v52 }
 0x80b   :  { %v2017_v22 = vadd.f32 %v2007_v8, %v1884_v61  ;;  %v2018_v62 = vadd.f32 %v2014_v3, %v1886_v47 }
 0x80d   :  { %2487 = vtanh.f32 %v2017_v22  ;;  %v2027_v63 = vrot.slane %v2017_v22, 1  ;;  %v2028_v49 = vrot.slane %v2018_v62, 1  ;;  %v2037_v56 = vrot.slane %v2017_v22, 2 }
 0x80e   :  { %2489 = vtanh.f32 %v2018_v62  ;;  %v2038_v2 = vrot.slane %v2018_v62, 2  ;;  %v2043_v6 = vrot.slane %v2017_v22, 3  ;;  %v2044_v12 = vrot.slane %v2018_v62, 3 }
 0x80f   :  { %2491 = vtanh.f32 %v2027_v63 }
 0x810   :  { %2493 = vtanh.f32 %v2028_v49 }
 0x811   :  { %2495 = vtanh.f32 %v2037_v56 }
 0x812   :  { %2497 = vtanh.f32 %v2038_v2 }
 0x813   :  { %2499 = vtanh.f32 %v2043_v6 }
 0x814   :  { %2501 = vtanh.f32 %v2044_v12 }
 0x81a   :  { %v2488_v57 = vpop.eup %2487 }
 0x81b   :  { %v2490_v10 = vpop.eup %2489  ;;  %v2021_v18 = vmul.f32 0.5, %v2488_v57 }
 0x81c   :  { %v2492_v19 = vpop.eup %2491  ;;  %v2022_v59 = vmul.f32 0.5, %v2490_v10 }
 0x81d   :  { %v2494_v20 = vpop.eup %2493  ;;  %v2023_v0 = vadd.f32 0.5, %v2021_v18  ;;  %v2033_v48 = vmul.f32 0.5, %v2492_v19 }
 0x81e   :  { %v2024_v51 = vadd.f32 0.5, %v2022_v59  ;;  %v2034_v17 = vmul.f32 0.5, %v2494_v20  ;;  %v2496_v53 = vpop.eup %2495 }
 0x81f   :  { %v2035_v1 = vadd.f32 0.5, %v2033_v48  ;;  %v2498_v55 = vpop.eup %2497  ;;  %v2055_v7 = vmul.f32 %v2496_v53, %v2023_v0 }
 0x820   :  { %v2036_v9 = vadd.f32 0.5, %v2034_v17  ;;  %v2056_v60 = vmul.f32 %v2498_v55, %v2024_v51  ;;  %v2500_v24 = vpop.eup %2499 }
 0x821   :  { %v2053_v11 = vmul.f32 %v2035_v1, %v3156_v15  ;;  %v2502_v25 = vpop.eup %2501  ;;  %v2049_v26 = vmul.f32 0.5, %v2500_v24 }
 0x822   :  { %v2054_v58 = vmul.f32 %v2036_v9, %v3158_v54  ;;  %v2050_v27 = vmul.f32 0.5, %v2502_v25 }
 0x823   :  { %v2057_v5 = vadd.f32 %v2055_v7, %v2053_v11  ;;  %v2051_v28 = vadd.f32 0.5, %v2049_v26 }
 0x824   :  { %v2058_v21 = vadd.f32 %v2056_v60, %v2054_v58  ;;  %v2052_v30 = vadd.f32 0.5, %v2050_v27 }
 0x825   :  { %2503 = vtanh.f32 %v2057_v5 }
 0x826   :  { %2505 = vtanh.f32 %v2058_v21 }
 0x832   :  { %v2504_v29 = vpop.eup %2503 }
 0x833   :  { %v2506_v31 = vpop.eup %2505  ;;  %v2061_v32 = vmul.f32 %v2504_v29, %v2051_v28 }
 0x834   :  { %v2062_v33 = vmul.f32 %v2506_v31, %v2052_v30 }
 0x836   :  { %v2088_v23 = vcombine.low %v2061_v32, %v2062_v33 }
 0x838   :  { %v2095_v15 = vrot.slane %v2088_v23, %v2805_v52 }
 0x83a   :  { %v2102_v54 = vrot.slane %v2095_v15, %v2805_v52 }
 0x83c   :  { %2287 = vmatmul.mubr.f32.vlgmr.msra.gmra.mxu0 %v2102_v54 }
 0x8fc   :  { %v2170_v35 = vpop.f32.mrf.mxu0 }
 0x8fd   :  { %v2171_v36 = vadd.f32 %v2236_v34, %v2170_v35 }
 0x8fe   :  { %v2288_v37 = vpop.f32.mrf.mxu0 }
 0x8ff   :  { %2175 = vst.msk [vmem:[#allocation6] sm:$0x3] %vm2174_vm4, %v2171_v36 }
 0x900   :  { %2570 = shalt.err (!%p2567_p9)
}
 0x901   :  { %2185 = dma.vmem_to_hbm [thread:$0]  %s2183_s16, 32, %s3247_s6, [#allocation5]  }
 0x902   :  { %2581 = dma.done.wait [#allocation5], 32  }
 0x903   :  { %2582 = vsyncadd [#allocation5], 4294967264 }
 0x904   :  { %2189 = vsyncpa [#allocation4], 1 }
 0x905   :  { %2190 = vsyncpa [#allocation5], 1 }

</bundles_post_ra>
